<compile_context>
chip_gen: v5e
topology: v5e:2x2
jax: 0.10.0
libtpu: 0.0.40
codegen_flags: <defaults>
</compile_context>

<pallas_src>
import math
import numpy as np
import jax
import jax.numpy as jnp
from jax.experimental import pallas as pl
from jax.experimental.pallas import tpu as pltpu

# ---------------- small, module-consistent hyperparameters ----------------
NUM_CAT = 2            # num_categorical_features
NUM_NUM = 2            # num_numerical_features
NUM_TARGETS = 3        # num_targets
EMBED = 16             # embedding_size (scaled down from 72)
NUM_HEADS = 4          # must divide D_MODEL (scaled down from 12)
NUM_BLOCKS = 2         # encoder layers (scaled down from 8)
DFF = 2048             # nn.TransformerEncoderLayer default dim_feedforward
D_MODEL = EMBED * (NUM_CAT + NUM_NUM)   # combined_features = 64
HEAD_DIM = D_MODEL // NUM_HEADS         # 16
LN_EPS = 1e-5

B = 2                  # batch
S = 8                  # sequence length
ROWS = B * S           # 16


def _layernorm(x, g, b):
    mu = jnp.mean(x, axis=-1, keepdims=True)
    var = jnp.mean((x - mu) ** 2, axis=-1, keepdims=True)
    return (x - mu) * jax.lax.rsqrt(var + LN_EPS) * g + b


# ---------------- fused per-layer kernel (grid over layers) ----------------
def encoder_layer_kernel(x_ref,
                         wqkv_ref, bqkv_ref, wo_ref, bo_ref,
                         w1_ref, b1_ref, w2_ref, b2_ref,
                         g1_ref, be1_ref, g2_ref, be2_ref,
                         wout_ref, bout_ref,
                         o_ref,
                         x_sc):
    """One post-norm encoder layer per grid step; mean-pool + head at the last step.

    x_ref : (ROWS, D) f32, fetched once (constant block index).
    Per-layer weight refs carry a squeezed leading layer dim; matmul weights are bf16.
    x_sc  : (ROWS, D) f32 VMEM scratch carrying the activations across grid steps.
    """
    l = pl.program_id(0)

    @pl.when(l == 0)
    def _():
        x_sc[...] = x_ref[...]

    x = x_sc[...]                                                      # (ROWS, D) f32

    # ---- fused QKV projection: bf16 x bf16 -> f32 on the MXU --------------------
    qkv = jnp.dot(x.astype(jnp.bfloat16), wqkv_ref[...],
                  preferred_element_type=jnp.float32) + bqkv_ref[...]  # (ROWS, 3D)
    qkv = qkv.reshape(B, S, 3 * D_MODEL)

    # ---- multi-head self-attention; out-projection accumulated per head ---------
    attn = jnp.zeros((ROWS, D_MODEL), jnp.float32)
    for h in range(NUM_HEADS):                                         # static unroll
        q = qkv[:, :, h * HEAD_DIM:(h + 1) * HEAD_DIM]                 # scale folded in wqkv
        k = qkv[:, :, D_MODEL + h * HEAD_DIM:D_MODEL + (h + 1) * HEAD_DIM]
        v = qkv[:, :, 2 * D_MODEL + h * HEAD_DIM:2 * D_MODEL + (h + 1) * HEAD_DIM]
        s = jnp.einsum('bqd,bkd->bqk', q, k,
                       preferred_element_type=jnp.float32)             # (B, S, S)
        s = s - jnp.max(s, axis=-1, keepdims=True)
        p = jnp.exp(s)
        p = p * pl.reciprocal(jnp.sum(p, axis=-1, keepdims=True), approx=True)
        ctx = jnp.einsum('bqk,bkd->bqd', p, v,
                         preferred_element_type=jnp.float32)           # (B, S, hd)
        attn = attn + jnp.dot(ctx.reshape(ROWS, HEAD_DIM).astype(jnp.bfloat16),
                              wo_ref[h * HEAD_DIM:(h + 1) * HEAD_DIM, :],
                              preferred_element_type=jnp.float32)
    attn = attn + bo_ref[...]

    # ---- residual + LN1 ; FFN(ReLU) + residual + LN2 (post-norm, dropout=identity)
    x = _layernorm(x + attn, g1_ref[...], be1_ref[...])
    h1 = jnp.maximum(jnp.dot(x.astype(jnp.bfloat16), w1_ref[...],
                             preferred_element_type=jnp.float32) + b1_ref[...], 0.0)
    h2 = jnp.dot(h1.astype(jnp.bfloat16), w2_ref[...],
                 preferred_element_type=jnp.float32) + b2_ref[...]
    x = _layernorm(x + h2, g2_ref[...], be2_ref[...])
    x_sc[...] = x

    # ---- last layer: mean pool over sequence + output head (only HBM write) -----
    @pl.when(l == NUM_BLOCKS - 1)
    def _():
        m = jnp.sum(x.reshape(B, S, D_MODEL), axis=1) * (1.0 / S)      # (B, D)
        y = jnp.dot(m, wout_ref[...], preferred_element_type=jnp.float32) + bout_ref[...]
        o_ref[...] = y.astype(o_ref.dtype)


# ---------------- embeddings are glue in plain JAX ----------------
def _embed(x_cat, x_num, params):
    # categorical_embedding: nn.Embedding(2, EMBED), flatten last two dims
    x_c = jnp.take(params["emb_table"], x_cat, axis=0)                 # (B, S, C, E)
    x_c = x_c.reshape(x_cat.shape[0], x_cat.shape[1], NUM_CAT * EMBED)
    # numerical_embedding: Linear(NUM_NUM -> EMBED*NUM_NUM)
    x_n = x_num @ params["num_w"].T + params["num_b"]                  # (B, S, E*N)
    return jnp.concatenate([x_c, x_n], axis=-1)                        # (B, S, D) f32


def forward(x_cat, x_num, params):
    x = _embed(x_cat, x_num, params).reshape(ROWS, D_MODEL)            # flatten in wrapper

    def layer_spec(*shape):
        return pl.BlockSpec((None,) + shape, lambda l, s=shape: (l,) + (0,) * len(s))

    def const_spec(*shape):
        return pl.BlockSpec(shape, lambda l, s=shape: (0,) * len(s))

    weight_args = (params["wqkv"], params["bqkv"], params["wo"], params["bo"],
                   params["w1"], params["b1"], params["w2"], params["b2"],
                   params["g1"], params["be1"], params["g2"], params["be2"],
                   params["out_w_t"], params["out_b"])
    flops = NUM_BLOCKS * (2 * ROWS * D_MODEL * 3 * D_MODEL            # QKV
                          + 4 * B * NUM_HEADS * S * S * HEAD_DIM      # scores + ctx
                          + 2 * ROWS * D_MODEL * D_MODEL              # out-proj
                          + 4 * ROWS * D_MODEL * DFF                  # FFN1 + FFN2
                          ) + 2 * B * D_MODEL * NUM_TARGETS
    bytes_accessed = (int(x.size) * 4 + B * NUM_TARGETS * 4
                      + sum(int(a.size) * a.dtype.itemsize for a in weight_args))
    transcendentals = NUM_BLOCKS * NUM_HEADS * B * S * S

    return pl.pallas_call(
        encoder_layer_kernel,
        out_shape=jax.ShapeDtypeStruct((B, NUM_TARGETS), jnp.float32),
        grid=(NUM_BLOCKS,),
        in_specs=[
            const_spec(ROWS, D_MODEL),                                 # x (fetched once)
            layer_spec(D_MODEL, 3 * D_MODEL), layer_spec(1, 3 * D_MODEL),
            layer_spec(D_MODEL, D_MODEL),     layer_spec(1, D_MODEL),
            layer_spec(D_MODEL, DFF),         layer_spec(1, DFF),
            layer_spec(DFF, D_MODEL),         layer_spec(1, D_MODEL),
            layer_spec(1, D_MODEL), layer_spec(1, D_MODEL),
            layer_spec(1, D_MODEL), layer_spec(1, D_MODEL),
            const_spec(D_MODEL, NUM_TARGETS), const_spec(1, NUM_TARGETS),
        ],
        out_specs=pl.BlockSpec((B, NUM_TARGETS), lambda l: (0, 0)),
        scratch_shapes=[pltpu.VMEM((ROWS, D_MODEL), jnp.float32)],     # carried activations
        compiler_params=pltpu.CompilerParams(dimension_semantics=("arbitrary",)),
        cost_estimate=pl.CostEstimate(flops=flops, transcendentals=transcendentals,
                                      bytes_accessed=bytes_accessed),
    )(x, *weight_args)


# ---------------- pure-JAX reference (same bf16-operand matmul numerics) ----------------
def _ref_ln(x, g, b):
    mu = x.mean(-1, keepdims=True)
    var = ((x - mu) ** 2).mean(-1, keepdims=True)
    return (x - mu) * jax.lax.rsqrt(var + LN_EPS) * g + b


def reference(x_cat, x_num, params):
    x = _embed(x_cat, x_num, params).reshape(ROWS, D_MODEL)
    bf = lambda a: a.astype(jnp.bfloat16)
    for l in range(NUM_BLOCKS):
        qkv = jnp.dot(bf(x), params["wqkv"][l],
                      preferred_element_type=jnp.float32) + params["bqkv"][l]
        qkv = qkv.reshape(B, S, 3 * D_MODEL)
        q = qkv[..., :D_MODEL].reshape(B, S, NUM_HEADS, HEAD_DIM)      # scale folded in
        k = qkv[..., D_MODEL:2 * D_MODEL].reshape(B, S, NUM_HEADS, HEAD_DIM)
        v = qkv[..., 2 * D_MODEL:].reshape(B, S, NUM_HEADS, HEAD_DIM)
        s = jnp.einsum('bqhd,bkhd->bhqk', q, k)
        p = jax.nn.softmax(s, axis=-1)
        ctx = jnp.einsum('bhqk,bkhd->bqhd', p, v).reshape(ROWS, D_MODEL)
        attn = jnp.dot(bf(ctx), params["wo"][l],
                       preferred_element_type=jnp.float32) + params["bo"][l]
        x = _ref_ln(x + attn, params["g1"][l], params["be1"][l])
        h1 = jnp.maximum(jnp.dot(bf(x), params["w1"][l],
                                 preferred_element_type=jnp.float32) + params["b1"][l], 0.0)
        h2 = jnp.dot(bf(h1), params["w2"][l],
                     preferred_element_type=jnp.float32) + params["b2"][l]
        x = _ref_ln(x + h2, params["g2"][l], params["be2"][l])
    m = x.reshape(B, S, D_MODEL).mean(axis=1)
    return m @ params["out_w_t"] + params["out_b"]


# ---------------- deterministic parameter init ----------------
def make_params(key):
    keys = iter(jax.random.split(key, 40))
    nxt = lambda: next(keys)
    w = lambda shape, s=0.1: jax.random.normal(nxt(), shape, jnp.float32) * s
    scale = 1.0 / math.sqrt(HEAD_DIM)

    layers = []
    for _ in range(NUM_BLOCKS):
        # 1/sqrt(head_dim) folded into the Q columns (weight + bias) at init time.
        wqkv = w((D_MODEL, 3 * D_MODEL)).at[:, :D_MODEL].multiply(scale)
        bqkv = w((1, 3 * D_MODEL)).at[:, :D_MODEL].multiply(scale)
        layers.append(dict(
            wqkv=wqkv, bqkv=bqkv,                       # in_proj weight^T / bias
            wo=w((D_MODEL, D_MODEL)), bo=w((1, D_MODEL)),   # out_proj
            w1=w((D_MODEL, DFF)), b1=w((1, DFF)),            # linear1
            w2=w((DFF, D_MODEL)), b2=w((1, D_MODEL)),        # linear2
            g1=1.0 + 0.1 * w((1, D_MODEL)), be1=0.1 * w((1, D_MODEL)),
            g2=1.0 + 0.1 * w((1, D_MODEL)), be2=0.1 * w((1, D_MODEL)),
        ))
    stack = lambda name: jnp.stack([l[name] for l in layers])   # leading layer axis

    return {
        "emb_table": w((2, EMBED)),
        "num_w": w((EMBED * NUM_NUM, NUM_NUM)),
        "num_b": w((EMBED * NUM_NUM,)),
        "out_w_t": w((D_MODEL, NUM_TARGETS)),           # final Linear weight, pre-transposed
        "out_b": w((1, NUM_TARGETS)),
        # matmul weights shipped in bf16; kernel and reference both consume bf16 operands.
        "wqkv": stack("wqkv").astype(jnp.bfloat16),
        "wo": stack("wo").astype(jnp.bfloat16),
        "w1": stack("w1").astype(jnp.bfloat16),
        "w2": stack("w2").astype(jnp.bfloat16),
        "bqkv": stack("bqkv"), "bo": stack("bo"),
        "b1": stack("b1"), "b2": stack("b2"),
        "g1": stack("g1"), "be1": stack("be1"),
        "g2": stack("g2"), "be2": stack("be2"),
    }


if __name__ == "__main__":
    key = jax.random.PRNGKey(0)
    kp, kc, kn = jax.random.split(key, 3)

    params = make_params(kp)
    x_cat = jax.random.randint(kc, (B, S, NUM_CAT), 0, 2, dtype=jnp.int32)  # vocab {0,1}
    x_num = jax.random.normal(kn, (B, S, NUM_NUM), jnp.float32)

    out = jax.block_until_ready(forward(x_cat, x_num, params))
    ref = jax.block_until_ready(reference(x_cat, x_num, params))

    assert out.shape == (B, NUM_TARGETS)
    np.testing.assert_allclose(np.asarray(out), np.asarray(ref, dtype=np.float32),
                               rtol=2e-3, atol=2e-3)

    print("KERNEL_OK")
</pallas_src>

<mosaic_0001>
module attributes {stable_mosaic.version = 11 : i64} {
  func.func @encoder_layer_kernel(%arg0: i32, %arg1: memref<16x64xf32, #tpu.memory_space<vmem>>, %arg2: memref<1x64x192xbf16, #tpu.memory_space<vmem>>, %arg3: memref<1x1x192xf32, #tpu.memory_space<vmem>>, %arg4: memref<1x64x64xbf16, #tpu.memory_space<vmem>>, %arg5: memref<1x1x64xf32, #tpu.memory_space<vmem>>, %arg6: memref<1x64x2048xbf16, #tpu.memory_space<vmem>>, %arg7: memref<1x1x2048xf32, #tpu.memory_space<vmem>>, %arg8: memref<1x2048x64xbf16, #tpu.memory_space<vmem>>, %arg9: memref<1x1x64xf32, #tpu.memory_space<vmem>>, %arg10: memref<1x1x64xf32, #tpu.memory_space<vmem>>, %arg11: memref<1x1x64xf32, #tpu.memory_space<vmem>>, %arg12: memref<1x1x64xf32, #tpu.memory_space<vmem>>, %arg13: memref<1x1x64xf32, #tpu.memory_space<vmem>>, %arg14: memref<64x3xf32, #tpu.memory_space<vmem>>, %arg15: memref<1x3xf32, #tpu.memory_space<vmem>>, %arg16: memref<2x3xf32, #tpu.memory_space<vmem>>, %arg17: memref<16x64xf32, #tpu.memory_space<vmem>>) attributes {dimension_semantics = [#tpu.dimension_semantics<arbitrary>], iteration_bounds = array<i64: 2>, scalar_prefetch = 0 : i64, scratch_operands = 1 : i64, tpu.core_type = #tpu.core_type<tc>, window_params = [{pipeline_mode = #tpu.pipeline_mode<synchronous>, transform_indices = @transform_0, window_bounds = array<i64: 16, 64>}, {transform_indices = @transform_1, window_bounds = array<i64: 1, 64, 192>}, {transform_indices = @transform_2, window_bounds = array<i64: 1, 1, 192>}, {transform_indices = @transform_3, window_bounds = array<i64: 1, 64, 64>}, {transform_indices = @transform_4, window_bounds = array<i64: 1, 1, 64>}, {transform_indices = @transform_5, window_bounds = array<i64: 1, 64, 2048>}, {transform_indices = @transform_6, window_bounds = array<i64: 1, 1, 2048>}, {transform_indices = @transform_7, window_bounds = array<i64: 1, 2048, 64>}, {transform_indices = @transform_8, window_bounds = array<i64: 1, 1, 64>}, {transform_indices = @transform_9, window_bounds = array<i64: 1, 1, 64>}, {transform_indices = @transform_10, window_bounds = array<i64: 1, 1, 64>}, {transform_indices = @transform_11, window_bounds = array<i64: 1, 1, 64>}, {transform_indices = @transform_12, window_bounds = array<i64: 1, 1, 64>}, {pipeline_mode = #tpu.pipeline_mode<synchronous>, transform_indices = @transform_13, window_bounds = array<i64: 64, 3>}, {pipeline_mode = #tpu.pipeline_mode<synchronous>, transform_indices = @transform_14, window_bounds = array<i64: 1, 3>}, {pipeline_mode = #tpu.pipeline_mode<synchronous>, transform_indices = @transform_15, window_bounds = array<i64: 2, 3>}]} {
    %c0_i32 = arith.constant 0 : i32
    %0 = arith.cmpi eq, %arg0, %c0_i32 : i32
    %1 = arith.extui %0 : i1 to i32
    %c0_i32_0 = arith.constant 0 : i32
    %2 = arith.cmpi ne, %1, %c0_i32_0 : i32
    scf.if %2 {
      %c0_81 = arith.constant 0 : index
      %c0_82 = arith.constant 0 : index
      %178 = vector.load %arg1[%c0_81, %c0_82] : memref<16x64xf32, #tpu.memory_space<vmem>>, vector<16x64xf32>
      %c0_83 = arith.constant 0 : index
      %c0_84 = arith.constant 0 : index
      %179 = vector.load %arg17[%c0_83, %c0_84] : memref<16x64xf32, #tpu.memory_space<vmem>>, vector<16x64xf32>
      tpu.vector_store %arg17[%c0_83, %c0_84], %178 {strides = array<i32>} : memref<16x64xf32, #tpu.memory_space<vmem>>, vector<16x64xf32>,
    } else {
    }
    %c0 = arith.constant 0 : index
    %c0_1 = arith.constant 0 : index
    %3 = vector.load %arg17[%c0, %c0_1] : memref<16x64xf32, #tpu.memory_space<vmem>>, vector<16x64xf32>
    %4 = arith.truncf %3 : vector<16x64xf32> to vector<16x64xbf16>
    %c0_2 = arith.constant 0 : index
    %c0_3 = arith.constant 0 : index
    %c0_4 = arith.constant 0 : index
    %5 = vector.load %arg2[%c0_2, %c0_3, %c0_4] : memref<1x64x192xbf16, #tpu.memory_space<vmem>>, vector<1x64x192xbf16>
    %6 = vector.shape_cast %5 : vector<1x64x192xbf16> to vector<64x192xbf16>
    %cst = arith.constant dense<0.000000e+00> : vector<16x192xf32>
    %7 = tpu.matmul %4, %6, %cst {dimension_numbers = #tpu.dot_dimension_numbers<[1], [0], [0], [1], [0, 0, 1, 1], [], []>} : vector<16x64xbf16>, vector<64x192xbf16>, vector<16x192xf32> -> vector<16x192xf32>
    %c0_5 = arith.constant 0 : index
    %c0_6 = arith.constant 0 : index
    %c0_7 = arith.constant 0 : index
    %8 = vector.load %arg3[%c0_5, %c0_6, %c0_7] : memref<1x1x192xf32, #tpu.memory_space<vmem>>, vector<1x1x192xf32>
    %9 = vector.shape_cast %8 : vector<1x1x192xf32> to vector<1x192xf32>
    %10 = vector.broadcast %9 : vector<1x192xf32> to vector<16x192xf32>
    %11 = arith.addf %7, %10 : vector<16x192xf32>
    %12 = vector.shape_cast %11 : vector<16x192xf32> to vector<2x8x192xf32>
    %cst_8 = arith.constant 0.000000e+00 : f32
    %13 = vector.broadcast %cst_8 : f32 to vector<16x64xf32>
    %14 = vector.extract_strided_slice %12 {offsets = [0, 0, 0], sizes = [2, 8, 16], strides = [1, 1, 1]} : vector<2x8x192xf32> to vector<2x8x16xf32>
    %15 = vector.extract_strided_slice %12 {offsets = [0, 0, 64], sizes = [2, 8, 16], strides = [1, 1, 1]} : vector<2x8x192xf32> to vector<2x8x16xf32>
    %16 = vector.extract_strided_slice %12 {offsets = [0, 0, 128], sizes = [2, 8, 16], strides = [1, 1, 1]} : vector<2x8x192xf32> to vector<2x8x16xf32>
    "tpu.trace_start"() <{level = 10 : i32, message = "bqd,bkd->bqk"}> : () -> ()
    %cst_9 = arith.constant dense<0.000000e+00> : vector<2x8x8xf32>
    %17 = tpu.matmul %14, %15, %cst_9 {dimension_numbers = #tpu.dot_dimension_numbers<[2], [2], [1], [1], [0, 0, 0, 1, 1, 1], [0], [0]>} : vector<2x8x16xf32>, vector<2x8x16xf32>, vector<2x8x8xf32> -> vector<2x8x8xf32>
    "tpu.trace_stop"() : () -> ()
    %cst_10 = arith.constant dense<0xFF800000> : vector<2x8xf32>
    %18 = vector.multi_reduction <maximumf>, %17, %cst_10 [2] : vector<2x8x8xf32> to vector<2x8xf32>
    %19 = vector.shape_cast %18 : vector<2x8xf32> to vector<2x8x1xf32>
    %20 = vector.broadcast %19 : vector<2x8x1xf32> to vector<2x8x8xf32>
    %21 = arith.subf %17, %20 : vector<2x8x8xf32>
    %22 = math.exp %21 : vector<2x8x8xf32>
    %cst_11 = arith.constant dense<0.000000e+00> : vector<2x8xf32>
    %23 = vector.multi_reduction <add>, %22, %cst_11 [2] : vector<2x8x8xf32> to vector<2x8xf32>
    %24 = vector.shape_cast %23 : vector<2x8xf32> to vector<2x8x1xf32>
    %25 = tpu.reciprocal %24 {approx = true} : vector<2x8x1xf32> -> vector<2x8x1xf32>
    %26 = vector.broadcast %25 : vector<2x8x1xf32> to vector<2x8x8xf32>
    %27 = arith.mulf %22, %26 : vector<2x8x8xf32>
    "tpu.trace_start"() <{level = 10 : i32, message = "bqk,bkd->bqd"}> : () -> ()
    %cst_12 = arith.constant dense<0.000000e+00> : vector<2x8x16xf32>
    %28 = tpu.matmul %27, %16, %cst_12 {dimension_numbers = #tpu.dot_dimension_numbers<[2], [1], [1], [2], [0, 0, 0, 1, 1, 2], [0], [0]>} : vector<2x8x8xf32>, vector<2x8x16xf32>, vector<2x8x16xf32> -> vector<2x8x16xf32>
    "tpu.trace_stop"() : () -> ()
    %29 = vector.shape_cast %28 : vector<2x8x16xf32> to vector<16x16xf32>
    %30 = arith.truncf %29 : vector<16x16xf32> to vector<16x16xbf16>
    %c0_13 = arith.constant 0 : index
    %c0_14 = arith.constant 0 : index
    %c0_15 = arith.constant 0 : index
    %31 = vector.load %arg4[%c0_13, %c0_14, %c0_15] : memref<1x64x64xbf16, #tpu.memory_space<vmem>>, vector<1x16x64xbf16>
    %32 = vector.shape_cast %31 : vector<1x16x64xbf16> to vector<16x64xbf16>
    %cst_16 = arith.constant dense<0.000000e+00> : vector<16x64xf32>
    %33 = tpu.matmul %30, %32, %cst_16 {dimension_numbers = #tpu.dot_dimension_numbers<[1], [0], [0], [1], [0, 0, 1, 1], [], []>} : vector<16x16xbf16>, vector<16x64xbf16>, vector<16x64xf32> -> vector<16x64xf32>
    %34 = arith.addf %13, %33 : vector<16x64xf32>
    %35 = vector.extract_strided_slice %12 {offsets = [0, 0, 16], sizes = [2, 8, 16], strides = [1, 1, 1]} : vector<2x8x192xf32> to vector<2x8x16xf32>
    %36 = vector.extract_strided_slice %12 {offsets = [0, 0, 80], sizes = [2, 8, 16], strides = [1, 1, 1]} : vector<2x8x192xf32> to vector<2x8x16xf32>
    %37 = vector.extract_strided_slice %12 {offsets = [0, 0, 144], sizes = [2, 8, 16], strides = [1, 1, 1]} : vector<2x8x192xf32> to vector<2x8x16xf32>
    "tpu.trace_start"() <{level = 10 : i32, message = "bqd,bkd->bqk"}> : () -> ()
    %cst_17 = arith.constant dense<0.000000e+00> : vector<2x8x8xf32>
    %38 = tpu.matmul %35, %36, %cst_17 {dimension_numbers = #tpu.dot_dimension_numbers<[2], [2], [1], [1], [0, 0, 0, 1, 1, 1], [0], [0]>} : vector<2x8x16xf32>, vector<2x8x16xf32>, vector<2x8x8xf32> -> vector<2x8x8xf32>
    "tpu.trace_stop"() : () -> ()
    %cst_18 = arith.constant dense<0xFF800000> : vector<2x8xf32>
    %39 = vector.multi_reduction <maximumf>, %38, %cst_18 [2] : vector<2x8x8xf32> to vector<2x8xf32>
    %40 = vector.shape_cast %39 : vector<2x8xf32> to vector<2x8x1xf32>
    %41 = vector.broadcast %40 : vector<2x8x1xf32> to vector<2x8x8xf32>
    %42 = arith.subf %38, %41 : vector<2x8x8xf32>
    %43 = math.exp %42 : vector<2x8x8xf32>
    %cst_19 = arith.constant dense<0.000000e+00> : vector<2x8xf32>
    %44 = vector.multi_reduction <add>, %43, %cst_19 [2] : vector<2x8x8xf32> to vector<2x8xf32>
    %45 = vector.shape_cast %44 : vector<2x8xf32> to vector<2x8x1xf32>
    %46 = tpu.reciprocal %45 {approx = true} : vector<2x8x1xf32> -> vector<2x8x1xf32>
    %47 = vector.broadcast %46 : vector<2x8x1xf32> to vector<2x8x8xf32>
    %48 = arith.mulf %43, %47 : vector<2x8x8xf32>
    "tpu.trace_start"() <{level = 10 : i32, message = "bqk,bkd->bqd"}> : () -> ()
    %cst_20 = arith.constant dense<0.000000e+00> : vector<2x8x16xf32>
    %49 = tpu.matmul %48, %37, %cst_20 {dimension_numbers = #tpu.dot_dimension_numbers<[2], [1], [1], [2], [0, 0, 0, 1, 1, 2], [0], [0]>} : vector<2x8x8xf32>, vector<2x8x16xf32>, vector<2x8x16xf32> -> vector<2x8x16xf32>
    "tpu.trace_stop"() : () -> ()
    %50 = vector.shape_cast %49 : vector<2x8x16xf32> to vector<16x16xf32>
    %51 = arith.truncf %50 : vector<16x16xf32> to vector<16x16xbf16>
    %c0_21 = arith.constant 0 : index
    %c16 = arith.constant 16 : index
    %c0_22 = arith.constant 0 : index
    %52 = vector.load %arg4[%c0_21, %c16, %c0_22] : memref<1x64x64xbf16, #tpu.memory_space<vmem>>, vector<1x16x64xbf16>
    %53 = vector.shape_cast %52 : vector<1x16x64xbf16> to vector<16x64xbf16>
    %cst_23 = arith.constant dense<0.000000e+00> : vector<16x64xf32>
    %54 = tpu.matmul %51, %53, %cst_23 {dimension_numbers = #tpu.dot_dimension_numbers<[1], [0], [0], [1], [0, 0, 1, 1], [], []>} : vector<16x16xbf16>, vector<16x64xbf16>, vector<16x64xf32> -> vector<16x64xf32>
    %55 = arith.addf %34, %54 : vector<16x64xf32>
    %56 = vector.extract_strided_slice %12 {offsets = [0, 0, 32], sizes = [2, 8, 16], strides = [1, 1, 1]} : vector<2x8x192xf32> to vector<2x8x16xf32>
    %57 = vector.extract_strided_slice %12 {offsets = [0, 0, 96], sizes = [2, 8, 16], strides = [1, 1, 1]} : vector<2x8x192xf32> to vector<2x8x16xf32>
    %58 = vector.extract_strided_slice %12 {offsets = [0, 0, 160], sizes = [2, 8, 16], strides = [1, 1, 1]} : vector<2x8x192xf32> to vector<2x8x16xf32>
    "tpu.trace_start"() <{level = 10 : i32, message = "bqd,bkd->bqk"}> : () -> ()
    %cst_24 = arith.constant dense<0.000000e+00> : vector<2x8x8xf32>
    %59 = tpu.matmul %56, %57, %cst_24 {dimension_numbers = #tpu.dot_dimension_numbers<[2], [2], [1], [1], [0, 0, 0, 1, 1, 1], [0], [0]>} : vector<2x8x16xf32>, vector<2x8x16xf32>, vector<2x8x8xf32> -> vector<2x8x8xf32>
    "tpu.trace_stop"() : () -> ()
    %cst_25 = arith.constant dense<0xFF800000> : vector<2x8xf32>
    %60 = vector.multi_reduction <maximumf>, %59, %cst_25 [2] : vector<2x8x8xf32> to vector<2x8xf32>
    %61 = vector.shape_cast %60 : vector<2x8xf32> to vector<2x8x1xf32>
    %62 = vector.broadcast %61 : vector<2x8x1xf32> to vector<2x8x8xf32>
    %63 = arith.subf %59, %62 : vector<2x8x8xf32>
    %64 = math.exp %63 : vector<2x8x8xf32>
    %cst_26 = arith.constant dense<0.000000e+00> : vector<2x8xf32>
    %65 = vector.multi_reduction <add>, %64, %cst_26 [2] : vector<2x8x8xf32> to vector<2x8xf32>
    %66 = vector.shape_cast %65 : vector<2x8xf32> to vector<2x8x1xf32>
    %67 = tpu.reciprocal %66 {approx = true} : vector<2x8x1xf32> -> vector<2x8x1xf32>
    %68 = vector.broadcast %67 : vector<2x8x1xf32> to vector<2x8x8xf32>
    %69 = arith.mulf %64, %68 : vector<2x8x8xf32>
    "tpu.trace_start"() <{level = 10 : i32, message = "bqk,bkd->bqd"}> : () -> ()
    %cst_27 = arith.constant dense<0.000000e+00> : vector<2x8x16xf32>
    %70 = tpu.matmul %69, %58, %cst_27 {dimension_numbers = #tpu.dot_dimension_numbers<[2], [1], [1], [2], [0, 0, 0, 1, 1, 2], [0], [0]>} : vector<2x8x8xf32>, vector<2x8x16xf32>, vector<2x8x16xf32> -> vector<2x8x16xf32>
    "tpu.trace_stop"() : () -> ()
    %71 = vector.shape_cast %70 : vector<2x8x16xf32> to vector<16x16xf32>
    %72 = arith.truncf %71 : vector<16x16xf32> to vector<16x16xbf16>
    %c0_28 = arith.constant 0 : index
    %c32 = arith.constant 32 : index
    %c0_29 = arith.constant 0 : index
    %73 = vector.load %arg4[%c0_28, %c32, %c0_29] : memref<1x64x64xbf16, #tpu.memory_space<vmem>>, vector<1x16x64xbf16>
    %74 = vector.shape_cast %73 : vector<1x16x64xbf16> to vector<16x64xbf16>
    %cst_30 = arith.constant dense<0.000000e+00> : vector<16x64xf32>
    %75 = tpu.matmul %72, %74, %cst_30 {dimension_numbers = #tpu.dot_dimension_numbers<[1], [0], [0], [1], [0, 0, 1, 1], [], []>} : vector<16x16xbf16>, vector<16x64xbf16>, vector<16x64xf32> -> vector<16x64xf32>
    %76 = arith.addf %55, %75 : vector<16x64xf32>
    %77 = vector.extract_strided_slice %12 {offsets = [0, 0, 48], sizes = [2, 8, 16], strides = [1, 1, 1]} : vector<2x8x192xf32> to vector<2x8x16xf32>
    %78 = vector.extract_strided_slice %12 {offsets = [0, 0, 112], sizes = [2, 8, 16], strides = [1, 1, 1]} : vector<2x8x192xf32> to vector<2x8x16xf32>
    %79 = vector.extract_strided_slice %12 {offsets = [0, 0, 176], sizes = [2, 8, 16], strides = [1, 1, 1]} : vector<2x8x192xf32> to vector<2x8x16xf32>
    "tpu.trace_start"() <{level = 10 : i32, message = "bqd,bkd->bqk"}> : () -> ()
    %cst_31 = arith.constant dense<0.000000e+00> : vector<2x8x8xf32>
    %80 = tpu.matmul %77, %78, %cst_31 {dimension_numbers = #tpu.dot_dimension_numbers<[2], [2], [1], [1], [0, 0, 0, 1, 1, 1], [0], [0]>} : vector<2x8x16xf32>, vector<2x8x16xf32>, vector<2x8x8xf32> -> vector<2x8x8xf32>
    "tpu.trace_stop"() : () -> ()
    %cst_32 = arith.constant dense<0xFF800000> : vector<2x8xf32>
    %81 = vector.multi_reduction <maximumf>, %80, %cst_32 [2] : vector<2x8x8xf32> to vector<2x8xf32>
    %82 = vector.shape_cast %81 : vector<2x8xf32> to vector<2x8x1xf32>
    %83 = vector.broadcast %82 : vector<2x8x1xf32> to vector<2x8x8xf32>
    %84 = arith.subf %80, %83 : vector<2x8x8xf32>
    %85 = math.exp %84 : vector<2x8x8xf32>
    %cst_33 = arith.constant dense<0.000000e+00> : vector<2x8xf32>
    %86 = vector.multi_reduction <add>, %85, %cst_33 [2] : vector<2x8x8xf32> to vector<2x8xf32>
    %87 = vector.shape_cast %86 : vector<2x8xf32> to vector<2x8x1xf32>
    %88 = tpu.reciprocal %87 {approx = true} : vector<2x8x1xf32> -> vector<2x8x1xf32>
    %89 = vector.broadcast %88 : vector<2x8x1xf32> to vector<2x8x8xf32>
    %90 = arith.mulf %85, %89 : vector<2x8x8xf32>
    "tpu.trace_start"() <{level = 10 : i32, message = "bqk,bkd->bqd"}> : () -> ()
    %cst_34 = arith.constant dense<0.000000e+00> : vector<2x8x16xf32>
    %91 = tpu.matmul %90, %79, %cst_34 {dimension_numbers = #tpu.dot_dimension_numbers<[2], [1], [1], [2], [0, 0, 0, 1, 1, 2], [0], [0]>} : vector<2x8x8xf32>, vector<2x8x16xf32>, vector<2x8x16xf32> -> vector<2x8x16xf32>
    "tpu.trace_stop"() : () -> ()
    %92 = vector.shape_cast %91 : vector<2x8x16xf32> to vector<16x16xf32>
    %93 = arith.truncf %92 : vector<16x16xf32> to vector<16x16xbf16>
    %c0_35 = arith.constant 0 : index
    %c48 = arith.constant 48 : index
    %c0_36 = arith.constant 0 : index
    %94 = vector.load %arg4[%c0_35, %c48, %c0_36] : memref<1x64x64xbf16, #tpu.memory_space<vmem>>, vector<1x16x64xbf16>
    %95 = vector.shape_cast %94 : vector<1x16x64xbf16> to vector<16x64xbf16>
    %cst_37 = arith.constant dense<0.000000e+00> : vector<16x64xf32>
    %96 = tpu.matmul %93, %95, %cst_37 {dimension_numbers = #tpu.dot_dimension_numbers<[1], [0], [0], [1], [0, 0, 1, 1], [], []>} : vector<16x16xbf16>, vector<16x64xbf16>, vector<16x64xf32> -> vector<16x64xf32>
    %97 = arith.addf %76, %96 : vector<16x64xf32>
    %c0_38 = arith.constant 0 : index
    %c0_39 = arith.constant 0 : index
    %c0_40 = arith.constant 0 : index
    %98 = vector.load %arg5[%c0_38, %c0_39, %c0_40] : memref<1x1x64xf32, #tpu.memory_space<vmem>>, vector<1x1x64xf32>
    %99 = vector.shape_cast %98 : vector<1x1x64xf32> to vector<1x64xf32>
    %100 = vector.broadcast %99 : vector<1x64xf32> to vector<16x64xf32>
    %101 = arith.addf %97, %100 : vector<16x64xf32>
    %102 = arith.addf %3, %101 : vector<16x64xf32>
    %c0_41 = arith.constant 0 : index
    %c0_42 = arith.constant 0 : index
    %c0_43 = arith.constant 0 : index
    %103 = vector.load %arg10[%c0_41, %c0_42, %c0_43] : memref<1x1x64xf32, #tpu.memory_space<vmem>>, vector<1x1x64xf32>
    %104 = vector.shape_cast %103 : vector<1x1x64xf32> to vector<1x64xf32>
    %c0_44 = arith.constant 0 : index
    %c0_45 = arith.constant 0 : index
    %c0_46 = arith.constant 0 : index
    %105 = vector.load %arg11[%c0_44, %c0_45, %c0_46] : memref<1x1x64xf32, #tpu.memory_space<vmem>>, vector<1x1x64xf32>
    %106 = vector.shape_cast %105 : vector<1x1x64xf32> to vector<1x64xf32>
    %cst_47 = arith.constant dense<0.000000e+00> : vector<16xf32>
    %107 = vector.multi_reduction <add>, %102, %cst_47 [1] : vector<16x64xf32> to vector<16xf32>
    %108 = vector.shape_cast %107 : vector<16xf32> to vector<16x1xf32>
    %cst_48 = arith.constant 6.400000e+01 : f32
    %109 = vector.broadcast %cst_48 : f32 to vector<16x1xf32>
    %110 = arith.divf %108, %109 : vector<16x1xf32>
    %111 = vector.broadcast %110 : vector<16x1xf32> to vector<16x64xf32>
    %112 = arith.subf %102, %111 : vector<16x64xf32>
    %113 = arith.mulf %112, %112 : vector<16x64xf32>
    %cst_49 = arith.constant dense<0.000000e+00> : vector<16xf32>
    %114 = vector.multi_reduction <add>, %113, %cst_49 [1] : vector<16x64xf32> to vector<16xf32>
    %115 = vector.shape_cast %114 : vector<16xf32> to vector<16x1xf32>
    %cst_50 = arith.constant 6.400000e+01 : f32
    %116 = vector.broadcast %cst_50 : f32 to vector<16x1xf32>
    %117 = arith.divf %115, %116 : vector<16x1xf32>
    %118 = vector.broadcast %110 : vector<16x1xf32> to vector<16x64xf32>
    %119 = arith.subf %102, %118 : vector<16x64xf32>
    %cst_51 = arith.constant 9.99999974E-6 : f32
    %120 = vector.broadcast %cst_51 : f32 to vector<16x1xf32>
    %121 = arith.addf %117, %120 : vector<16x1xf32>
    %122 = math.rsqrt %121 : vector<16x1xf32>
    %123 = vector.broadcast %122 : vector<16x1xf32> to vector<16x64xf32>
    %124 = arith.mulf %119, %123 : vector<16x64xf32>
    %125 = vector.broadcast %104 : vector<1x64xf32> to vector<16x64xf32>
    %126 = arith.mulf %124, %125 : vector<16x64xf32>
    %127 = vector.broadcast %106 : vector<1x64xf32> to vector<16x64xf32>
    %128 = arith.addf %126, %127 : vector<16x64xf32>
    %129 = arith.truncf %128 : vector<16x64xf32> to vector<16x64xbf16>
    %c0_52 = arith.constant 0 : index
    %c0_53 = arith.constant 0 : index
    %c0_54 = arith.constant 0 : index
    %130 = vector.load %arg6[%c0_52, %c0_53, %c0_54] : memref<1x64x2048xbf16, #tpu.memory_space<vmem>>, vector<1x64x2048xbf16>
    %131 = vector.shape_cast %130 : vector<1x64x2048xbf16> to vector<64x2048xbf16>
    %cst_55 = arith.constant dense<0.000000e+00> : vector<16x2048xf32>
    %132 = tpu.matmul %129, %131, %cst_55 {dimension_numbers = #tpu.dot_dimension_numbers<[1], [0], [0], [1], [0, 0, 1, 1], [], []>} : vector<16x64xbf16>, vector<64x2048xbf16>, vector<16x2048xf32> -> vector<16x2048xf32>
    %c0_56 = arith.constant 0 : index
    %c0_57 = arith.constant 0 : index
    %c0_58 = arith.constant 0 : index
    %133 = vector.load %arg7[%c0_56, %c0_57, %c0_58] : memref<1x1x2048xf32, #tpu.memory_space<vmem>>, vector<1x1x2048xf32>
    %134 = vector.shape_cast %133 : vector<1x1x2048xf32> to vector<1x2048xf32>
    %135 = vector.broadcast %134 : vector<1x2048xf32> to vector<16x2048xf32>
    %136 = arith.addf %132, %135 : vector<16x2048xf32>
    %cst_59 = arith.constant 0.000000e+00 : f32
    %137 = vector.broadcast %cst_59 : f32 to vector<16x2048xf32>
    %138 = arith.maximumf %136, %137 : vector<16x2048xf32>
    %139 = arith.truncf %138 : vector<16x2048xf32> to vector<16x2048xbf16>
    %c0_60 = arith.constant 0 : index
    %c0_61 = arith.constant 0 : index
    %c0_62 = arith.constant 0 : index
    %140 = vector.load %arg8[%c0_60, %c0_61, %c0_62] : memref<1x2048x64xbf16, #tpu.memory_space<vmem>>, vector<1x2048x64xbf16>
    %141 = vector.shape_cast %140 : vector<1x2048x64xbf16> to vector<2048x64xbf16>
    %cst_63 = arith.constant dense<0.000000e+00> : vector<16x64xf32>
    %142 = tpu.matmul %139, %141, %cst_63 {dimension_numbers = #tpu.dot_dimension_numbers<[1], [0], [0], [1], [0, 0, 1, 1], [], []>} : vector<16x2048xbf16>, vector<2048x64xbf16>, vector<16x64xf32> -> vector<16x64xf32>
    %c0_64 = arith.constant 0 : index
    %c0_65 = arith.constant 0 : index
    %c0_66 = arith.constant 0 : index
    %143 = vector.load %arg9[%c0_64, %c0_65, %c0_66] : memref<1x1x64xf32, #tpu.memory_space<vmem>>, vector<1x1x64xf32>
    %144 = vector.shape_cast %143 : vector<1x1x64xf32> to vector<1x64xf32>
    %145 = vector.broadcast %144 : vector<1x64xf32> to vector<16x64xf32>
    %146 = arith.addf %142, %145 : vector<16x64xf32>
    %147 = arith.addf %128, %146 : vector<16x64xf32>
    %c0_67 = arith.constant 0 : index
    %c0_68 = arith.constant 0 : index
    %c0_69 = arith.constant 0 : index
    %148 = vector.load %arg12[%c0_67, %c0_68, %c0_69] : memref<1x1x64xf32, #tpu.memory_space<vmem>>, vector<1x1x64xf32>
    %149 = vector.shape_cast %148 : vector<1x1x64xf32> to vector<1x64xf32>
    %c0_70 = arith.constant 0 : index
    %c0_71 = arith.constant 0 : index
    %c0_72 = arith.constant 0 : index
    %150 = vector.load %arg13[%c0_70, %c0_71, %c0_72] : memref<1x1x64xf32, #tpu.memory_space<vmem>>, vector<1x1x64xf32>
    %151 = vector.shape_cast %150 : vector<1x1x64xf32> to vector<1x64xf32>
    %cst_73 = arith.constant dense<0.000000e+00> : vector<16xf32>
    %152 = vector.multi_reduction <add>, %147, %cst_73 [1] : vector<16x64xf32> to vector<16xf32>
    %153 = vector.shape_cast %152 : vector<16xf32> to vector<16x1xf32>
    %cst_74 = arith.constant 6.400000e+01 : f32
    %154 = vector.broadcast %cst_74 : f32 to vector<16x1xf32>
    %155 = arith.divf %153, %154 : vector<16x1xf32>
    %156 = vector.broadcast %155 : vector<16x1xf32> to vector<16x64xf32>
    %157 = arith.subf %147, %156 : vector<16x64xf32>
    %158 = arith.mulf %157, %157 : vector<16x64xf32>
    %cst_75 = arith.constant dense<0.000000e+00> : vector<16xf32>
    %159 = vector.multi_reduction <add>, %158, %cst_75 [1] : vector<16x64xf32> to vector<16xf32>
    %160 = vector.shape_cast %159 : vector<16xf32> to vector<16x1xf32>
    %cst_76 = arith.constant 6.400000e+01 : f32
    %161 = vector.broadcast %cst_76 : f32 to vector<16x1xf32>
    %162 = arith.divf %160, %161 : vector<16x1xf32>
    %163 = vector.broadcast %155 : vector<16x1xf32> to vector<16x64xf32>
    %164 = arith.subf %147, %163 : vector<16x64xf32>
    %cst_77 = arith.constant 9.99999974E-6 : f32
    %165 = vector.broadcast %cst_77 : f32 to vector<16x1xf32>
    %166 = arith.addf %162, %165 : vector<16x1xf32>
    %167 = math.rsqrt %166 : vector<16x1xf32>
    %168 = vector.broadcast %167 : vector<16x1xf32> to vector<16x64xf32>
    %169 = arith.mulf %164, %168 : vector<16x64xf32>
    %170 = vector.broadcast %149 : vector<1x64xf32> to vector<16x64xf32>
    %171 = arith.mulf %169, %170 : vector<16x64xf32>
    %172 = vector.broadcast %151 : vector<1x64xf32> to vector<16x64xf32>
    %173 = arith.addf %171, %172 : vector<16x64xf32>
    %c0_78 = arith.constant 0 : index
    %c0_79 = arith.constant 0 : index
    %174 = vector.load %arg17[%c0_78, %c0_79] : memref<16x64xf32, #tpu.memory_space<vmem>>, vector<16x64xf32>
    tpu.vector_store %arg17[%c0_78, %c0_79], %173 {strides = array<i32>} : memref<16x64xf32, #tpu.memory_space<vmem>>, vector<16x64xf32>,
    %c1_i32 = arith.constant 1 : i32
    %175 = arith.cmpi eq, %arg0, %c1_i32 : i32
    %176 = arith.extui %175 : i1 to i32
    %c0_i32_80 = arith.constant 0 : i32
    %177 = arith.cmpi ne, %176, %c0_i32_80 : i32
    scf.if %177 {
      %178 = vector.shape_cast %173 : vector<16x64xf32> to vector<2x8x64xf32>
      %cst_81 = arith.constant dense<0.000000e+00> : vector<2x64xf32>
      %179 = vector.multi_reduction <add>, %178, %cst_81 [1] : vector<2x8x64xf32> to vector<2x64xf32>
      %cst_82 = arith.constant 1.250000e-01 : f32
      %180 = vector.broadcast %cst_82 : f32 to vector<2x64xf32>
      %181 = arith.mulf %179, %180 : vector<2x64xf32>
      %c0_83 = arith.constant 0 : index
      %c0_84 = arith.constant 0 : index
      %182 = vector.load %arg14[%c0_83, %c0_84] : memref<64x3xf32, #tpu.memory_space<vmem>>, vector<64x3xf32>
      %cst_85 = arith.constant dense<0.000000e+00> : vector<2x3xf32>
      %183 = tpu.matmul %181, %182, %cst_85 {dimension_numbers = #tpu.dot_dimension_numbers<[1], [0], [0], [1], [0, 0, 1, 1], [], []>} : vector<2x64xf32>, vector<64x3xf32>, vector<2x3xf32> -> vector<2x3xf32>
      %c0_86 = arith.constant 0 : index
      %c0_87 = arith.constant 0 : index
      %184 = vector.load %arg15[%c0_86, %c0_87] : memref<1x3xf32, #tpu.memory_space<vmem>>, vector<1x3xf32>
      %185 = vector.broadcast %184 : vector<1x3xf32> to vector<2x3xf32>
      %186 = arith.addf %183, %185 : vector<2x3xf32>
      %c0_88 = arith.constant 0 : index
      %c0_89 = arith.constant 0 : index
      %187 = vector.load %arg16[%c0_88, %c0_89] : memref<2x3xf32, #tpu.memory_space<vmem>>, vector<2x3xf32>
      tpu.vector_store %arg16[%c0_88, %c0_89], %186 {strides = array<i32>} : memref<2x3xf32, #tpu.memory_space<vmem>>, vector<2x3xf32>,
    } else {
    }
    return
  }
  func.func @transform_0(%arg0: i32) -> (i32, i32) {
    %c0_i32 = arith.constant 0 : i32
    %c0_i32_0 = arith.constant 0 : i32
    %c0_i32_1 = arith.constant 0 : i32
    return %c0_i32, %c0_i32_0 : i32, i32
  }
  func.func @transform_1(%arg0: i32) -> (i32, i32, i32) {
    %c0_i32 = arith.constant 0 : i32
    %c0_i32_0 = arith.constant 0 : i32
    %c0_i32_1 = arith.constant 0 : i32
    return %arg0, %c0_i32, %c0_i32_0 : i32, i32, i32
  }
  func.func @transform_2(%arg0: i32) -> (i32, i32, i32) {
    %c0_i32 = arith.constant 0 : i32
    %c0_i32_0 = arith.constant 0 : i32
    %c0_i32_1 = arith.constant 0 : i32
    return %arg0, %c0_i32, %c0_i32_0 : i32, i32, i32
  }
  func.func @transform_3(%arg0: i32) -> (i32, i32, i32) {
    %c0_i32 = arith.constant 0 : i32
    %c0_i32_0 = arith.constant 0 : i32
    %c0_i32_1 = arith.constant 0 : i32
    return %arg0, %c0_i32, %c0_i32_0 : i32, i32, i32
  }
  func.func @transform_4(%arg0: i32) -> (i32, i32, i32) {
    %c0_i32 = arith.constant 0 : i32
    %c0_i32_0 = arith.constant 0 : i32
    %c0_i32_1 = arith.constant 0 : i32
    return %arg0, %c0_i32, %c0_i32_0 : i32, i32, i32
  }
  func.func @transform_5(%arg0: i32) -> (i32, i32, i32) {
    %c0_i32 = arith.constant 0 : i32
    %c0_i32_0 = arith.constant 0 : i32
    %c0_i32_1 = arith.constant 0 : i32
    return %arg0, %c0_i32, %c0_i32_0 : i32, i32, i32
  }
  func.func @transform_6(%arg0: i32) -> (i32, i32, i32) {
    %c0_i32 = arith.constant 0 : i32
    %c0_i32_0 = arith.constant 0 : i32
    %c0_i32_1 = arith.constant 0 : i32
    return %arg0, %c0_i32, %c0_i32_0 : i32, i32, i32
  }
  func.func @transform_7(%arg0: i32) -> (i32, i32, i32) {
    %c0_i32 = arith.constant 0 : i32
    %c0_i32_0 = arith.constant 0 : i32
    %c0_i32_1 = arith.constant 0 : i32
    return %arg0, %c0_i32, %c0_i32_0 : i32, i32, i32
  }
  func.func @transform_8(%arg0: i32) -> (i32, i32, i32) {
    %c0_i32 = arith.constant 0 : i32
    %c0_i32_0 = arith.constant 0 : i32
    %c0_i32_1 = arith.constant 0 : i32
    return %arg0, %c0_i32, %c0_i32_0 : i32, i32, i32
  }
  func.func @transform_9(%arg0: i32) -> (i32, i32, i32) {
    %c0_i32 = arith.constant 0 : i32
    %c0_i32_0 = arith.constant 0 : i32
    %c0_i32_1 = arith.constant 0 : i32
    return %arg0, %c0_i32, %c0_i32_0 : i32, i32, i32
  }
  func.func @transform_10(%arg0: i32) -> (i32, i32, i32) {
    %c0_i32 = arith.constant 0 : i32
    %c0_i32_0 = arith.constant 0 : i32
    %c0_i32_1 = arith.constant 0 : i32
    return %arg0, %c0_i32, %c0_i32_0 : i32, i32, i32
  }
  func.func @transform_11(%arg0: i32) -> (i32, i32, i32) {
    %c0_i32 = arith.constant 0 : i32
    %c0_i32_0 = arith.constant 0 : i32
    %c0_i32_1 = arith.constant 0 : i32
    return %arg0, %c0_i32, %c0_i32_0 : i32, i32, i32
  }
  func.func @transform_12(%arg0: i32) -> (i32, i32, i32) {
    %c0_i32 = arith.constant 0 : i32
    %c0_i32_0 = arith.constant 0 : i32
    %c0_i32_1 = arith.constant 0 : i32
    return %arg0, %c0_i32, %c0_i32_0 : i32, i32, i32
  }
  func.func @transform_13(%arg0: i32) -> (i32, i32) {
    %c0_i32 = arith.constant 0 : i32
    %c0_i32_0 = arith.constant 0 : i32
    %c0_i32_1 = arith.constant 0 : i32
    return %c0_i32, %c0_i32_0 : i32, i32
  }
  func.func @transform_14(%arg0: i32) -> (i32, i32) {
    %c0_i32 = arith.constant 0 : i32
    %c0_i32_0 = arith.constant 0 : i32
    %c0_i32_1 = arith.constant 0 : i32
    return %c0_i32, %c0_i32_0 : i32, i32
  }
  func.func @transform_15(%arg0: i32) -> (i32, i32) {
    %c0_i32 = arith.constant 0 : i32
    %c0_i32_0 = arith.constant 0 : i32
    %c0_i32_1 = arith.constant 0 : i32
    return %c0_i32, %c0_i32_0 : i32, i32
  }
}

</mosaic_0001>

<bundles_post_ra>
// kernel: tpu_custom_call.1
= control target key start
LH: loop header
LB: loop body
LE: loop exit
PB: predicated region body
PF: predicated region fallthrough
CT: control target
= control target key end

     0   :  { %s5606_s0 = inlined_call_operand.vmem [shape: f32[16,64], index: 0, kind: input, shape index: {}]   ;;  %s5607_s1 = inlined_call_operand.vmem [shape: bf16[2,64,192], index: 1, kind: input, shape index: {}]   ;;  %s5608_s2 = inlined_call_operand.vmem [shape: f32[2,1,192], index: 2, kind: input, shape index: {}]   ;;  %s5609_s3 = inlined_call_operand.vmem [shape: bf16[2,64,64], index: 3, kind: input, shape index: {}]   ;;  %s5610_s4 = inlined_call_operand.vmem [shape: f32[2,1,64], index: 4, kind: input, shape index: {}]   ;;  %s5611_s5 = inlined_call_operand.vmem [shape: bf16[2,64,2048], index: 5, kind: input, shape index: {}]   ;;  %s5612_s6 = inlined_call_operand.vmem [shape: f32[2,1,2048], index: 6, kind: input, shape index: {}]   ;;  %s5613_s7 = inlined_call_operand.vmem [shape: bf16[2,2048,64], index: 7, kind: input, shape index: {}]   ;;  %s5614_s8 = inlined_call_operand.vmem [shape: f32[2,1,64], index: 8, kind: input, shape index: {}]   ;;  %s5615_s9 = inlined_call_operand.vmem [shape: f32[2,1,64], index: 9, kind: input, shape index: {}]   ;;  %s5616_s10 = inlined_call_operand.vmem [shape: f32[2,1,64], index: 10, kind: input, shape index: {}]   ;;  %s5617_s11 = inlined_call_operand.vmem [shape: f32[2,1,64], index: 11, kind: input, shape index: {}]   ;;  %s5618_s12 = inlined_call_operand.vmem [shape: f32[2,1,64], index: 12, kind: input, shape index: {}]   ;;  %s5619_s13 = inlined_call_operand.vmem [shape: f32[64,3], index: 13, kind: input, shape index: {}]   ;;  %s5620_s14 = inlined_call_operand.vmem [shape: f32[1,3], index: 14, kind: input, shape index: {}]   ;;  %s5621_s15 = inlined_call_operand.hbm [shape: f32[2,3], index: 15, kind: output, shape index: {}]  }
   0x1   :  { %5625 = sst [smem:[#allocation8_spill]] %s5607_s1 }
   0x2   :  { %5626 = sst [smem:[#allocation9_spill]] %s5608_s2 }
   0x3   :  { %5627 = sst [smem:[#allocation10_spill]] %s5609_s3 }
   0x4   :  { %5628 = sst [smem:[#allocation11_spill]] %s5611_s5 }
   0x5   :  { %5629 = sst [smem:[#allocation12_spill]] %s5612_s6 }
   0x6   :  { %5630 = sst [smem:[#allocation13_spill]] %s5619_s13 }
   0x7   :  { %5631 = sst [smem:[#allocation14_spill]] %s5620_s14 }
   0x8   :  { %5632 = sst [smem:[#allocation15_spill]] %s5621_s15 }
   0x9   :  { %20 = vsyncpa [#allocation4], 0  ;;  %s4975_s18 = smov 0  }
   0xa LB: > { %5633 = sst [smem:[#allocation6_spill]] %s4884_s18  ;;  %s4981_s19 = sadd.s32 4294967295, %s4884_s18   ;;  %s4884_s18 = sphi %s4975_s18, %s26_s18  }
   0xb   : > { %p3686_p0 = scmp.ge.s32.totalorder %s4884_s18, 1  ;;  %p529_p1 = scmp.lt.s32.totalorder %s4884_s18, 3 }
   0xd   : > { %p530_p2 = pnand %p3686_p0, %p529_p1 }
   0xf   : > { %533 = sbr.rel (%p530_p2) target bundleno = 3236 (0xca4), region = 80 }
  0x14   : > { %p613_p3 = scmp.lt.s32.totalorder %s4981_s19, 1  ;;  %s5634_s1 = sld [smem:[#allocation8_spill]] }
  0x15   : > { %s5635_s2 = sld [smem:[#allocation9_spill]]  ;;  %p3697_p4 = scmp.ne.s32.totalorder %s4981_s19, 0 }
  0x16   : > { %s4987_s20 = scalar_select %p613_p3, %s4981_s19, 1 }
  0x17   : > { %s5636_s3 = sld [smem:[#allocation10_spill]] }
  0x18   : > { %s4566_s21 = sshll.u32 %s4987_s20, 6  ;;  %s3689_s22 = sshll.u32 %s4987_s20, 1 }
  0x19   : > { %s4567_s29 = sshll.u32 %s4987_s20, 5  ;;  %s4568_s13 = sshll.u32 %s4987_s20, 9 }
  0x1a   : > { %s4994_s25 = scalar_lea.vmem %s5634_s1, %s4566_s21  ;;  %s5637_s5 = sld [smem:[#allocation11_spill]] }
  0x1b   : > { %s4999_s28 = scalar_lea.vmem %s5635_s2, %s3689_s22  ;;  %s3694_s1 = sshll.u32 %s4987_s20, 4 }
  0x1c   : > { %s5638_s6 = sld [smem:[#allocation12_spill]]  ;;  %s4569_s2 = sshll.u32 %s4987_s20, 10 }
  0x1d   : > { %s5009_s14 = scalar_lea.vmem %s5636_s3, %s4567_s29  ;;  %s5027_s17 = scalar_lea.vmem %s5613_s7, %s4569_s2 }
  0x1e   : > { %s646_s29 = scalar_lea.vmem %s5614_s8, %s4987_s20  ;;  %s652_s26 = scalar_lea.vmem %s5616_s10, %s4987_s20 }
  0x1f   : > { %s658_s2 = scalar_lea.vmem %s5618_s12, %s4987_s20  ;;  %663 = sbr.rel (%p3697_p4) target bundleno = 39 (0x27), region = 84 }
  0x20   : > { %s5015_s21 = scalar_lea.vmem %s5637_s5, %s4568_s13  ;;  %s649_s13 = scalar_lea.vmem %s5615_s9, %s4987_s20 }
  0x22   : > { %s5021_s27 = scalar_lea.vmem %s5638_s6, %s3694_s1  ;;  %s655_s6 = scalar_lea.vmem %s5617_s11, %s4987_s20 }
  0x23   : > { %5639 = sst [smem:[#allocation7_spill]] %s5021_s27 }
  0x24   : > { %v664_v0 = vld [vmem:[%s5606_s0] sm:$0xff]  ;;  %vm666_vm0 = vcmask 523264   ;;  %v665_v1 = vld [vmem:[%s5606_s0 + $0x8] sm:$0xff] }
  0x25   : > { %667 = vst.msk [vmem:[#allocation2] sm:$0xff] %vm666_vm0, %v664_v0 }
  0x26   : > { %668 = vst.msk [vmem:[#allocation2 + $0x8] sm:$0xff] %vm666_vm0, %v665_v1 }
  0x27 PF: > { %v3724_v2 = vld [vmem:[%s4994_s25 + $0x30] sm:$0xf]  ;;  %v4577_v3 = vld [vmem:[%s4994_s25 + $0x34] sm:$0xf0]  ;;  %v3716_v4 = vld [vmem:[%s4994_s25 + $0x20] sm:$0xf] }
  0x28   : > { %v3725_v5 = vor.u32 %v4577_v3, %v3724_v2  ;;  %v4575_v6 = vld [vmem:[%s4994_s25 + $0x24] sm:$0xf0]  ;;  %v3708_v8 = vld [vmem:[%s4994_s25 + $0x10] sm:$0xf]  ;;  %v4576_v9 = vld [vmem:[%s4994_s25 + $0x34] sm:$0xf] }
  0x29   : > { %v3717_v7 = vor.u32 %v4575_v6, %v3716_v4  ;;  %v3726_v10 = vld [vmem:[%s4994_s25 + $0x38] sm:$0xf0]  ;;  %v4573_v11 = vld [vmem:[%s4994_s25 + $0x14] sm:$0xf0]  ;;  %v4574_v13 = vld [vmem:[%s4994_s25 + $0x24] sm:$0xf] }
  0x2a   : > { %734 = vmatpush.bf16.msra.mxu0 %v3725_v5  ;;  %v3729_v12 = vor.u32 %v4576_v9, %v3726_v10  ;;  %v3718_v14 = vld [vmem:[%s4994_s25 + $0x28] sm:$0xf0]  ;;  %v3700_v15 = vld [vmem:[%s4994_s25] sm:$0xf]  ;;  %v4572_v17 = vld [vmem:[%s4994_s25 + $0x14] sm:$0xf]  ;;  %v3709_v18 = vor.u32 %v4573_v11, %v3708_v8 }
  0x2b   : > { %v3721_v16 = vor.u32 %v4574_v13, %v3718_v14  ;;  %v3710_v19 = vld [vmem:[%s4994_s25 + $0x18] sm:$0xf0]  ;;  %v4571_v20 = vld [vmem:[%s4994_s25 + $0x4] sm:$0xf0]  ;;  %v4570_v25 = vld [vmem:[%s4994_s25 + $0x4] sm:$0xf] }
  0x2c   : > { %748 = vmatpush.bf16.msra.mxu1 %v3729_v12  ;;  %v5070_v21 = vld [vmem:[#allocation2] sm:$0xff]  ;;  %v3713_v22 = vor.u32 %v4572_v17, %v3710_v19  ;;  %v3701_v23 = vor.u32 %v4571_v20, %v3700_v15  ;;  %v3702_v26 = vld [vmem:[%s4994_s25 + $0x8] sm:$0xf0]  ;;  %vm726_vm1 = vcmask 523264   ;;  %s4886_s5 = smov 48   ;;  %s4887_s25 = smov 64  }
  0x2d   : > { %v5072_v24 = vld [vmem:[#allocation2 + $0x8] sm:$0xff]  ;;  %v3705_v28 = vor.u32 %v4570_v25, %v3702_v26  ;;  %v680_v29 = vld [vmem:[%s4999_s28] sm:$0x3]  ;;  %s4888_s27 = smov 112   ;;  %vm761_vm2 = vcmask 130048   ;;  %vm813_vm3 = vcmask 64512  }
  0x2e   : > { %735 = vmatpush.bf16.msra.mxu0 %v3717_v7  ;;  %v671_v27 = vpack.c.bf16 %v5072_v24, %v5070_v21  ;;  %v682_v30 = vperm.slane %v680_v29, 0  ;;  %v683_v32 = vperm.slane %v680_v29, 1  ;;  %s4889_s28 = smov 32   ;;  %s4890_s23 = smov 96  }
  0x2f   : > { %s4891_s24 = smov 16   ;;  %s4892_s1 = smov 80  }
  0x30   : > { %749 = vmatpush.bf16.msra.mxu1 %v3721_v16  ;;  %v4578_v16 = vld [vmem:[%s5009_s14] sm:$0xff]  ;;  %p4560_p5 = scmp.ne.s32.totalorder %s4981_s19, 1 }
  0x32   : > { %736 = vmatpush.bf16.msra.mxu0 %v3709_v18 }
  0x34   : > { %750 = vmatpush.bf16.msra.mxu1 %v3713_v22 }
  0x36   : > { %737 = vmatpush.bf16.msra.mxu0 %v3701_v23 }
  0x38   : > { %751 = vmatpush.bf16.msra.mxu1 %v3705_v28 }
  0x39   : > { %3730 = vmatmul.msk.bf16.vlgmr.msra.gmra.mxu0 %vm726_vm1, %v671_v27 }
  0x3b   : > { %3731 = vmatmul.msk.bf16.vlgmr.msra.gmra.mxu1 %vm726_vm1, %v671_v27 }
  0x3c   : > { %1059 = vmatpush.bf16.msrb.mxu1 %v4578_v16 }
  0xb6   : > { %v739_v31 = vpop.f32.mrf.mxu0 }
  0xb7   : > { %v5081_v33 = vadd.f32 %v739_v31, %v682_v30 }
  0xb8   : > { %v753_v34 = vpop.f32.mrf.mxu1 }
  0xb9   : > { %887 = vrot.lane.b32.xlu2 %v5081_v33, %s4886_s5  ;;  %759 = vrot.lane.b32.xlu0 %v5081_v33, %s4887_s25  ;;  %v5086_v35 = vadd.f32 %v753_v34, %v683_v32 }
  0xbb   : > { %854 = vmatpush.msra.mxu2 %v5086_v35 }
  0xbe   : > { %v741_v38 = vpop.f32.mrf.mxu0 }
  0xbf   : > { %v5097_v46 = vadd.f32 %v741_v38, %v682_v30 }
  0xc0   : > { %v755_v51 = vpop.f32.mrf.mxu1 }
  0xc1   : > { %885 = vrot.lane.b32.xlu2 %v5081_v33, %s4888_s27  ;;  %v5102_v52 = vadd.f32 %v755_v51, %v683_v32  ;;  %v4579_v51 = vld [vmem:[%s5009_s14 + $0x8] sm:$0xff] }
 0x113   : > { %v888_v36 = vpop.permute.xlu2 %887 }
 0x114   : > { %3738 = vmatpush.xpose.msk.msrb.mxu2 %vm761_vm2, %v888_v36 }
 0x11b   : > { %v886_v50 = vpop.permute.xlu2 %885 }
 0x12b   : > { %v760_v37 = vpop.permute.xlu0 %759 }
 0x12c   : > { %3732 = vmatpush.xpose.msk.msrb.mxu0 %vm761_vm2, %v760_v37 }
 0x12f   : > { %3733 = vmatmul.msk.f32.vlgmr.msrb.gmra.mxu0 %vm761_vm2, %v5081_v33 }
 0x130   : > { %1036 = vmatpush.bf16.msra.mxu0 %v4579_v51 }
 0x1ac   : > { %v783_v39 = vpop.f32.mrf.mxu0 }
 0x1ad   : > { %v814_v40 = vsel %vm813_vm3, %v783_v39, -inf }
 0x1ae   : > { %815 = vmax.xlane.f32.xlu0 %v814_v40 }
 0x221   : > { %v816_v41 = vpop.xlane.xlu0 %815 }
 0x222   : > { %v820_v42 = vsub.f32 %v783_v39, %v816_v41 }
 0x224   : > { %v822_v43 = vmul.f32 1.442695, %v820_v42 }
 0x226   : > { %4803 = vpow2.f32 %v822_v43 }
 0x22c   : > { %v4804_v44 = vpop.eup %4803 }
 0x22d   : > { %v826_v45 = vsel %vm813_vm3, %v4804_v44, 0.0 }
 0x22e   : > { %827 = vadd.xlane.f32.xlu1 %v826_v45 }
 0x247   : > { %787 = vrot.lane.b32.xlu1 %v5097_v46, %s4887_s25 }
 0x2a1   : > { %v828_v47 = vpop.xlane.xlu1 %827 }
 0x2a2   : > { %4805 = vrcp.f32 %v828_v47 }
 0x2a8   : > { %v4806_v48 = vpop.eup %4805 }
 0x2a9   : > { %v834_v49 = vmul.f32 %v4806_v48, %v4804_v44 }
 0x2ab   : > { %3736 = vmatmul.msk.f32.vlgmr.msra.gmra.mxu2 %vm813_vm3, %v834_v49 }
 0x2b3   : > { %3739 = vmatmul.msk.f32.vlgmr.msrb.gmra.mxu2 %vm761_vm2, %v886_v50 }
 0x2b9   : > { %v788_v53 = vpop.permute.xlu1 %787 }
 0x2ba   : > { %3734 = vmatpush.xpose.msk.msra.mxu3 %vm761_vm2, %v788_v53 }
 0x2bd   : > { %3735 = vmatmul.msk.f32.vlgmr.msra.gmra.mxu3 %vm761_vm2, %v5097_v46 }
 0x2be   : > { %877 = vmatpush.msrb.mxu3 %v5102_v52 }
 0x32e   : > { %v856_v54 = vpop.f32.mrf.mxu2 }
 0x336   : > { %v910_v55 = vpop.f32.mrf.mxu2 }
 0x337   : > { %v941_v56 = vsel %vm813_vm3, %v910_v55, -inf }
 0x338   : > { %942 = vmax.xlane.f32.xlu1 %v941_v56 }
 0x340   : > { %v810_v57 = vpop.f32.mrf.mxu3 }
 0x341   : > { %v817_v58 = vsel %vm813_vm3, %v810_v57, -inf }
 0x342   : > { %818 = vmax.xlane.f32.xlu2 %v817_v58 }
 0x351   : > { %964 = vrot.lane.b32.xlu1 %v5086_v35, %s4888_s27 }
 0x359   : > { %1096 = vrot.lane.b32.xlu1 %v5097_v46, %s4889_s28 }
 0x3ab   : > { %v943_v59 = vpop.xlane.xlu1 %942 }
 0x3ac   : > { %v947_v60 = vsub.f32 %v910_v55, %v943_v59 }
 0x3ae   : > { %v949_v61 = vmul.f32 1.442695, %v947_v60 }
 0x3b0   : > { %4807 = vpow2.f32 %v949_v61 }
 0x3b5   : > { %v819_v62 = vpop.xlane.xlu2 %818 }
 0x3b6   : > { %v4808_v63 = vpop.eup %4807  ;;  %v821_v0 = vsub.f32 %v810_v57, %v819_v62 }
 0x3b7   : > { %v953_v1 = vsel %vm813_vm3, %v4808_v63, 0.0 }
 0x3b8   : > { %v824_v2 = vmul.f32 1.442695, %v821_v0  ;;  %954 = vadd.xlane.f32.xlu2 %v953_v1 }
 0x3ba   : > { %4809 = vpow2.f32 %v824_v2 }
 0x3c0   : > { %v4810_v3 = vpop.eup %4809 }
 0x3c1   : > { %v829_v4 = vsel %vm813_vm3, %v4810_v3, 0.0 }
 0x3c2   : > { %830 = vadd.xlane.f32.xlu0 %v829_v4 }
 0x3c3   : > { %v965_v5 = vpop.permute.xlu1 %964 }
 0x3c4   : > { %985 = vmatpush.msra.mxu2 %v965_v5 }
 0x3cb   : > { %v1097_v30 = vpop.permute.xlu1 %1096 }
 0x3d0   : > { %913 = vrot.lane.b32.xlu2 %v5097_v46, %s4888_s27 }
 0x3d6   : > { %915 = vrot.lane.b32.xlu0 %v5097_v46, %s4886_s5 }
 0x3de   : > { %1068 = vrot.lane.b32.xlu0 %v5081_v33, %s4889_s28 }
 0x3e6   : > { %1066 = vrot.lane.b32.xlu0 %v5081_v33, %s4890_s23 }
 0x42b   : > { %v955_v6 = vpop.xlane.xlu2 %954 }
 0x42c   : > { %4811 = vrcp.f32 %v955_v6 }
 0x432   : > { %v4812_v7 = vpop.eup %4811 }
 0x433   : > { %v961_v8 = vmul.f32 %v4812_v7, %v4808_v63  ;;  %v914_v13 = vpop.permute.xlu2 %913 }
 0x435   : > { %v831_v9 = vpop.xlane.xlu0 %830  ;;  %3742 = vmatmul.msk.f32.vlgmr.msra.gmra.mxu2 %vm813_vm3, %v961_v8 }
 0x436   : > { %4813 = vrcp.f32 %v831_v9 }
 0x43c   : > { %v4814_v10 = vpop.eup %4813 }
 0x43d   : > { %v835_v11 = vmul.f32 %v4814_v10, %v4810_v3 }
 0x43f   : > { %3737 = vmatmul.msk.f32.vlgmr.msrb.gmra.mxu3 %vm813_vm3, %v835_v11 }
 0x448   : > { %v916_v12 = vpop.permute.xlu0 %915 }
 0x449   : > { %3740 = vmatpush.xpose.msk.msra.mxu3 %vm761_vm2, %v916_v12 }
 0x44c   : > { %3741 = vmatmul.msk.f32.vlgmr.msra.gmra.mxu3 %vm761_vm2, %v914_v13 }
 0x450   : > { %v1069_v14 = vpop.permute.xlu0 %1068 }
 0x451   : > { %3754 = vmatpush.xpose.msk.msrb.mxu2 %vm761_vm2, %v1069_v14 }
 0x458   : > { %v1067_v15 = vpop.permute.xlu0 %1066 }
 0x459   : > { %3755 = vmatmul.msk.f32.vlgmr.msrb.gmra.mxu2 %vm761_vm2, %v1067_v15 }
 0x4b8   : > { %v987_v22 = vpop.f32.mrf.mxu2 }
 0x4c2   : > { %v879_v17 = vpop.f32.mrf.mxu3 }
 0x4c3   : > { %v882_v18 = vpack.c.bf16 %v879_v17, %v856_v54 }
 0x4c5   : > { %3753 = vmatmul.msk.bf16.vlgmr.msrb.gmra.mxu1 %vm761_vm2, %v882_v18 }
 0x4cf   : > { %v938_v19 = vpop.f32.mrf.mxu3 }
 0x4d0   : > { %v944_v20 = vsel %vm813_vm3, %v938_v19, -inf }
 0x4d1   : > { %945 = vmax.xlane.f32.xlu2 %v944_v20 }
 0x4dc   : > { %v1091_v23 = vpop.f32.mrf.mxu2 }
 0x4dd   : > { %v1122_v25 = vsel %vm813_vm3, %v1091_v23, -inf }
 0x4de   : > { %1123 = vmax.xlane.f32.xlu0 %v1122_v25 }
 0x4e9   : > { %991 = vrot.lane.b32.xlu2 %v5102_v52, %s4888_s27 }
 0x4f1   : > { %1144 = vrot.lane.b32.xlu2 %v5086_v35, %s4890_s23 }
 0x4f2   : > { %1094 = vrot.lane.b32.xlu0 %v5097_v46, %s4890_s23 }
 0x4f9   : > { %1226 = vrot.lane.b32.xlu2 %v5081_v33, %s4891_s24 }
 0x501   : > { %1252 = vrot.lane.b32.xlu2 %v5097_v46, %s4892_s1 }
 0x542   : > { %v5155_v53 = vpop.f32.mrf.mxu1 }
 0x544   : > { %v946_v26 = vpop.xlane.xlu2 %945 }
 0x545   : > { %v948_v27 = vsub.f32 %v938_v19, %v946_v26 }
 0x547   : > { %v951_v28 = vmul.f32 1.442695, %v948_v27  ;;  %v4580_v27 = vld [vmem:[%s5009_s14 + $0x10] sm:$0xff] }
 0x548   : > { %1215 = vmatpush.bf16.msrb.mxu0 %v4580_v27  ;;  %v4615_v27 = vld [vmem:[%s5015_s21 + $0x10c] sm:$0xf] }
 0x549   : > { %4815 = vpow2.f32 %v951_v28  ;;  %v4581_v28 = vld [vmem:[%s5009_s14 + $0x18] sm:$0xff]  ;;  %s5640_s14 = scalar_lea.vmem %s5610_s4, %s4987_s20 }
 0x54a   : > { %v5157_v55 = vpop.f32.mrf.mxu1 }
 0x54c   : > { %v992_v29 = vpop.permute.xlu2 %991 }
 0x54d   : > { %1012 = vmatpush.msrb.mxu3 %v992_v29 }
 0x54f   : > { %3756 = vmatpush.xpose.msk.msra.mxu3 %vm761_vm2, %v1097_v30  ;;  %v4816_v31 = vpop.eup %4815 }
 0x550   : > { %v956_v32 = vsel %vm813_vm3, %v4816_v31, 0.0 }
 0x551   : > { %957 = vadd.xlane.f32.xlu1 %v956_v32  ;;  %v1124_v34 = vpop.xlane.xlu0 %1123 }
 0x552   : > { %v1128_v36 = vsub.f32 %v1091_v23, %v1124_v34 }
 0x554   : > { %v1130_v37 = vmul.f32 1.442695, %v1128_v36  ;;  %v1145_v38 = vpop.permute.xlu2 %1144 }
 0x555   : > { %1165 = vmatpush.msra.mxu2 %v1145_v38 }
 0x556   : > { %4817 = vpow2.f32 %v1130_v37 }
 0x55c   : > { %v4818_v39 = vpop.eup %4817  ;;  %v1227_v40 = vpop.permute.xlu2 %1226 }
 0x55d   : > { %3765 = vmatpush.xpose.msk.msra.mxu1 %vm761_vm2, %v1227_v40  ;;  %v1134_v41 = vsel %vm813_vm3, %v4818_v39, 0.0 }
 0x55e   : > { %1135 = vadd.xlane.f32.xlu0 %v1134_v41  ;;  %v4797_v41 = vld [vmem:[%s5640_s14] ss:$0 sm:$0xff] }
 0x564   : > { %v1095_v43 = vpop.permute.xlu0 %1094 }
 0x56a   : > { %1224 = vrot.lane.b32.xlu1 %v5081_v33, %s4892_s1 }
 0x572   : > { %1254 = vrot.lane.b32.xlu0 %v5097_v46, %s4891_s24  ;;  %v1253_v46 = vpop.permute.xlu2 %1252 }
 0x5c4   : > { %v958_v42 = vpop.xlane.xlu1 %957 }
 0x5c5   : > { %4819 = vrcp.f32 %v958_v42 }
 0x5cb   : > { %v4820_v44 = vpop.eup %4819 }
 0x5cc   : > { %v962_v45 = vmul.f32 %v4820_v44, %v4816_v31 }
 0x5ce   : > { %3743 = vmatmul.msk.f32.vlgmr.msrb.gmra.mxu3 %vm813_vm3, %v962_v45 }
 0x5d1   : > { %v1136_v47 = vpop.xlane.xlu0 %1135 }
 0x5d2   : > { %4821 = vrcp.f32 %v1136_v47 }
 0x5d6   : > { %3757 = vmatmul.msk.f32.vlgmr.msra.gmra.mxu3 %vm761_vm2, %v1095_v43 }
 0x5d8   : > { %v4822_v48 = vpop.eup %4821 }
 0x5d9   : > { %v1142_v49 = vmul.f32 %v4822_v48, %v4818_v39 }
 0x5db   : > { %3758 = vmatmul.msk.f32.vlgmr.msra.gmra.mxu2 %vm813_vm3, %v1142_v49 }
 0x5dc   : > { %v1225_v50 = vpop.permute.xlu1 %1224 }
 0x5dd   : > { %3766 = vmatmul.msk.f32.vlgmr.msra.gmra.mxu1 %vm761_vm2, %v1225_v50 }
 0x5e4   : > { %v1255_v33 = vpop.permute.xlu0 %1254 }
 0x5e5   : > { %3767 = vmatpush.xpose.msk.msrb.mxu2 %vm761_vm2, %v1255_v33 }
 0x5e8   : > { %3768 = vmatmul.msk.f32.vlgmr.msrb.gmra.mxu2 %vm761_vm2, %v1253_v46 }
 0x5e9   : > { %1373 = vmatpush.bf16.msra.mxu2 %v4581_v28  ;;  %v3916_v28 = vld [vmem:[%s5015_s21 + $0x148] sm:$0xf0] }
 0x651   : > { %v1014_v54 = vpop.f32.mrf.mxu3 }
 0x652   : > { %v1017_v56 = vpack.c.bf16 %v1014_v54, %v987_v22 }
 0x654   : > { %3748 = vmatmul.msk.bf16.vlgmr.msra.gmra.mxu0 %vm761_vm2, %v1017_v56  ;;  %v4893_v56 = vmov 64.0  }
 0x659   : > { %v1119_v57 = vpop.f32.mrf.mxu3 }
 0x65a   : > { %v1249_v58 = vpop.f32.mrf.mxu1  ;;  %v1125_v59 = vsel %vm813_vm3, %v1119_v57, -inf }
 0x65b   : > { %1126 = vmax.xlane.f32.xlu0 %v1125_v59  ;;  %v1280_v60 = vsel %vm813_vm3, %v1249_v58, -inf }
 0x65c   : > { %1281 = vmax.xlane.f32.xlu1 %v1280_v60 }
 0x65e   : > { %v1167_v61 = vpop.f32.mrf.mxu2 }
 0x66b   : > { %v1277_v62 = vpop.f32.mrf.mxu2 }
 0x66c   : > { %v1283_v63 = vsel %vm813_vm3, %v1277_v62, -inf }
 0x66d   : > { %1284 = vmax.xlane.f32.xlu2 %v1283_v63 }
 0x685   : > { %1170 = vrot.lane.b32.xlu2 %v5102_v52, %s4890_s23 }
 0x6ce   : > { %v1127_v0 = vpop.xlane.xlu0 %1126 }
 0x6cf   : > { %v1129_v1 = vsub.f32 %v1119_v57, %v1127_v0  ;;  %v1282_v2 = vpop.xlane.xlu1 %1281 }
 0x6d0   : > { %v1286_v3 = vsub.f32 %v1249_v58, %v1282_v2 }
 0x6d1   : > { %v1132_v4 = vmul.f32 1.442695, %v1129_v1  ;;  %v1038_v36 = vpop.f32.mrf.mxu0 }
 0x6d2   : > { %v1288_v5 = vmul.f32 1.442695, %v1286_v3  ;;  %v1062_v39 = vadd.f32 %v5155_v53, %v1038_v36  ;;  %v3844_v36 = vld [vmem:[%s5015_s21 + $0xc0] sm:$0xf0] }
 0x6d3   : > { %4823 = vpow2.f32 %v1132_v4 }
 0x6d4   : > { %4825 = vpow2.f32 %v1288_v5 }
 0x6d9   : > { %v4824_v6 = vpop.eup %4823  ;;  %v1040_v37 = vpop.f32.mrf.mxu0 }
 0x6da   : > { %v4826_v7 = vpop.eup %4825  ;;  %v1137_v8 = vsel %vm813_vm3, %v4824_v6, 0.0  ;;  %v1064_v47 = vadd.f32 %v5157_v55, %v1040_v37  ;;  %v3850_v37 = vld [vmem:[%s5015_s21 + $0x88] sm:$0xf] }
 0x6db   : > { %1138 = vadd.xlane.f32.xlu0 %v1137_v8  ;;  %v1292_v9 = vsel %vm813_vm3, %v4826_v7, 0.0  ;;  %v4630_v8 = vld [vmem:[%s5015_s21 + $0x184] sm:$0xf] }
 0x6dc   : > { %1293 = vadd.xlane.f32.xlu1 %v1292_v9 }
 0x6e0   : > { %v1285_v10 = vpop.xlane.xlu2 %1284 }
 0x6e1   : > { %v1287_v11 = vsub.f32 %v1277_v62, %v1285_v10  ;;  %v3972_v10 = vld [vmem:[%s5015_s21 + $0x1c0] sm:$0xf0] }
 0x6e3   : > { %v1290_v12 = vmul.f32 1.442695, %v1287_v11  ;;  %v3978_v11 = vld [vmem:[%s5015_s21 + $0x188] sm:$0xf] }
 0x6e5   : > { %4827 = vpow2.f32 %v1290_v12  ;;  %v4639_v12 = vld [vmem:[%s5015_s21 + $0x1c4] sm:$0xf0] }
 0x6e8   : > { %v1171_v13 = vpop.permute.xlu2 %1170 }
 0x6e9   : > { %1191 = vmatpush.msrb.mxu3 %v1171_v13  ;;  %v3975_v13 = vor.u32 %v4630_v8, %v3972_v10  ;;  %v3922_v8 = vld [vmem:[%s5015_s21 + $0x110] sm:$0xf] }
 0x6eb   : > { %v4828_v14 = vpop.eup %4827 }
 0x6ec   : > { %v1295_v15 = vsel %vm813_vm3, %v4828_v14, 0.0 }
 0x6ed   : > { %1296 = vadd.xlane.f32.xlu0 %v1295_v15  ;;  %v4631_v15 = vld [vmem:[%s5015_s21 + $0x18c] sm:$0xf] }
 0x6f5   : > { %1302 = vrot.lane.b32.xlu1 %v5086_v35, %s4892_s1 }
 0x701   : > { %1328 = vrot.lane.b32.xlu0 %v5102_v52, %s4892_s1 }
 0x74e   : > { %v1139_v16 = vpop.xlane.xlu0 %1138 }
 0x74f   : > { %4829 = vrcp.f32 %v1139_v16  ;;  %v1294_v19 = vpop.xlane.xlu1 %1293  ;;  %v3980_v16 = vld [vmem:[%s5015_s21 + $0x1c8] sm:$0xf0] }
 0x750   : > { %4831 = vrcp.f32 %v1294_v19  ;;  %v4622_v19 = vld [vmem:[%s5015_s21 + $0x13c] sm:$0xf0] }
 0x755   : > { %v4830_v17 = vpop.eup %4829 }
 0x756   : > { %v1143_v18 = vmul.f32 %v4830_v17, %v4824_v6  ;;  %v4832_v20 = vpop.eup %4831  ;;  %v3970_v6 = vld [vmem:[%s5015_s21 + $0x180] sm:$0xf]  ;;  %v3983_v17 = vor.u32 %v4631_v15, %v3980_v16  ;;  %v3930_v16 = vld [vmem:[%s5015_s21 + $0x118] sm:$0xf] }
 0x757   : > { %v1300_v22 = vmul.f32 %v4832_v20, %v4826_v7  ;;  %v4638_v7 = vld [vmem:[%s5015_s21 + $0x1bc] sm:$0xf0]  ;;  %v4614_v20 = vld [vmem:[%s5015_s21 + $0x104] sm:$0xf] }
 0x758   : > { %3759 = vmatmul.msk.f32.vlgmr.msrb.gmra.mxu3 %vm813_vm3, %v1143_v18  ;;  %v3971_v9 = vor.u32 %v4638_v7, %v3970_v6  ;;  %v3906_v18 = vld [vmem:[%s5015_s21 + $0x100] sm:$0xf]  ;;  %1923 = vmatpush.bf16.msrb.mxu2 %v3983_v17  ;;  %v4633_v6 = vld [vmem:[%s5015_s21 + $0x19c] sm:$0xf]  ;;  %v4625_v17 = vld [vmem:[%s5015_s21 + $0x154] sm:$0xf0] }
 0x759   : > { %v3996_v7 = vld [vmem:[%s5015_s21 + $0x1d8] sm:$0xf0] }
 0x75a   : > { %1881 = vmatpush.bf16.msra.mxu0 %v3971_v9  ;;  %v3999_v10 = vor.u32 %v4633_v6, %v3996_v7  ;;  %v4002_v6 = vld [vmem:[%s5015_s21 + $0x1a0] sm:$0xf]  ;;  %v4634_v7 = vld [vmem:[%s5015_s21 + $0x1a4] sm:$0xf] }
 0x760   : > { %v1297_v23 = vpop.xlane.xlu0 %1296 }
 0x761   : > { %4833 = vrcp.f32 %v1297_v23  ;;  %v3908_v23 = vld [vmem:[%s5015_s21 + $0x140] sm:$0xf0] }
 0x762   : > { %4835 = vrcp.f32 %v4893_v56 }
 0x767   : > { %v1303_v25 = vpop.permute.xlu1 %1302  ;;  %v4834_v35 = vpop.eup %4833 }
 0x768   : > { %1323 = vmatpush.msra.mxu3 %v1303_v25  ;;  %v1301_v52 = vmul.f32 %v4834_v35, %v4828_v14  ;;  %v4836_v57 = vpop.eup %4835  ;;  %v3979_v14 = vor.u32 %v4639_v12, %v3978_v11  ;;  %v3914_v25 = vld [vmem:[%s5015_s21 + $0x108] sm:$0xf]  ;;  %v4624_v11 = vld [vmem:[%s5015_s21 + $0x14c] sm:$0xf0]  ;;  %v4616_v12 = vld [vmem:[%s5015_s21 + $0x114] sm:$0xf] }
 0x769   : > { %3769 = vmatmul.msk.f32.vlgmr.msra.gmra.mxu3 %vm813_vm3, %v1300_v22  ;;  %v1399_v58 = vmul.f32 64.0, %v4836_v57  ;;  %vm1403_vm4 = vweird.f32 %v4836_v57  ;;  %v3907_v22 = vor.u32 %v4622_v19, %v3906_v18  ;;  %v4623_v35 = vld [vmem:[%s5015_s21 + $0x144] sm:$0xf0]  ;;  %v4617_v18 = vld [vmem:[%s5015_s21 + $0x11c] sm:$0xf] }
 0x76a   : > { %1895 = vmatpush.bf16.msrb.mxu3 %v3975_v13  ;;  %v3924_v13 = vld [vmem:[%s5015_s21 + $0x150] sm:$0xf0] }
 0x76b   : > { %v1400_v59 = vsub.f32 1.0, %v1399_v58  ;;  %1882 = vmatpush.bf16.msra.mxu0 %v3907_v22  ;;  %v3788_v58 = vld [vmem:[%s5015_s21 + $0x48] sm:$0xf0]  ;;  %v3927_v15 = vor.u32 %v4616_v12, %v3924_v13  ;;  %v3931_v22 = vor.u32 %v4625_v17, %v3930_v16  ;;  %v4643_v12 = vld [vmem:[%s5015_s21 + $0x1e4] sm:$0xf0] }
 0x76c   : > { %v4635_v13 = vld [vmem:[%s5015_s21 + $0x1ac] sm:$0xf]  ;;  %v3938_v17 = vld [vmem:[%s5015_s21 + $0x120] sm:$0xf] }
 0x76d   : > { %v1401_v55 = vmul.f32 %v4836_v57, %v1400_v59 }
 0x773   : > { %v1329_v26 = vpop.permute.xlu0 %1328 }
 0x774   : > { %1349 = vmatpush.msrb.mxu1 %v1329_v26  ;;  %v3915_v26 = vor.u32 %v4623_v35, %v3914_v25  ;;  %v3858_v25 = vld [vmem:[%s5015_s21 + $0x90] sm:$0xf] }
 0x775   : > { %3770 = vmatmul.msk.f32.vlgmr.msrb.gmra.mxu1 %vm813_vm3, %v1301_v52  ;;  %v3911_v52 = vor.u32 %v4614_v20, %v3908_v23  ;;  %v3932_v23 = vld [vmem:[%s5015_s21 + $0x158] sm:$0xf0] }
 0x776   : > { %1909 = vmatpush.bf16.msra.mxu1 %v3979_v14  ;;  %v3923_v14 = vor.u32 %v4624_v11, %v3922_v8  ;;  %v4004_v8 = vld [vmem:[%s5015_s21 + $0x1e0] sm:$0xf0] }
 0x777   : > { %1896 = vmatpush.bf16.msrb.mxu3 %v3911_v52  ;;  %v3935_v52 = vor.u32 %v4617_v18, %v3932_v23  ;;  %v4007_v16 = vor.u32 %v4634_v7, %v4004_v8  ;;  %v4626_v18 = vld [vmem:[%s5015_s21 + $0x15c] sm:$0xf0]  ;;  %v3940_v23 = vld [vmem:[%s5015_s21 + $0x160] sm:$0xf0]  ;;  %v4620_v7 = vld [vmem:[%s5015_s21 + $0x134] sm:$0xf] }
 0x778   : > { %v3956_v8 = vld [vmem:[%s5015_s21 + $0x170] sm:$0xf0] }
 0x77a   : > { %1910 = vmatpush.bf16.msra.mxu1 %v3915_v26  ;;  %v4608_v26 = vld [vmem:[%s5015_s21 + $0xcc] sm:$0xf0] }
 0x7db   : > { %v1193_v29 = vpop.f32.mrf.mxu3 }
 0x7dc   : > { %v1196_v30 = vpack.c.bf16 %v1193_v29, %v1167_v61  ;;  %v3919_v29 = vor.u32 %v4615_v27, %v3916_v28  ;;  %v4600_v27 = vld [vmem:[%s5015_s21 + $0x94] sm:$0xf] }
 0x7dd   : > { %v3860_v28 = vld [vmem:[%s5015_s21 + $0xd0] sm:$0xf0] }
 0x7de   : > { %3764 = vmatmul.msk.bf16.vlgmr.msrb.gmra.mxu0 %vm761_vm2, %v1196_v30  ;;  %v3842_v30 = vld [vmem:[%s5015_s21 + $0x80] sm:$0xf]  ;;  %1924 = vmatpush.bf16.msrb.mxu2 %v3919_v29  ;;  %v3859_v29 = vor.u32 %v4608_v26, %v3858_v25  ;;  %v3946_v25 = vld [vmem:[%s5015_s21 + $0x128] sm:$0xf]  ;;  %v3948_v26 = vld [vmem:[%s5015_s21 + $0x168] sm:$0xf0] }
 0x7ec   : > { %v1325_v31 = vpop.f32.mrf.mxu3 }
 0x7f2   : > { %v1351_v32 = vpop.f32.mrf.mxu1 }
 0x7f3   : > { %v1354_v34 = vpack.c.bf16 %v1351_v32, %v1325_v31  ;;  %v4606_v31 = vld [vmem:[%s5015_s21 + $0xbc] sm:$0xf0]  ;;  %v4598_v32 = vld [vmem:[%s5015_s21 + $0x84] sm:$0xf] }
 0x7f5   : > { %3775 = vmatmul.msk.bf16.vlgmr.msra.gmra.mxu2 %vm761_vm2, %v1354_v34  ;;  %v3843_v34 = vor.u32 %v4606_v31, %v3842_v30  ;;  %v3866_v30 = vld [vmem:[%s5015_s21 + $0x98] sm:$0xf] }
 0x7f6   : > { %v4609_v31 = vld [vmem:[%s5015_s21 + $0xd4] sm:$0xf0] }
 0x7f7   : > { %1883 = vmatpush.bf16.msra.mxu0 %v3843_v34  ;;  %v3863_v34 = vor.u32 %v4600_v27, %v3860_v28  ;;  %v3939_v27 = vor.u32 %v4626_v18, %v3938_v17  ;;  %v3890_v17 = vld [vmem:[%s5015_s21 + $0xb0] sm:$0xf] }
 0x7f8   : > { %v4612_v18 = vld [vmem:[%s5015_s21 + $0xec] sm:$0xf0] }
 0x85b   : > { %v1217_v38 = vpop.f32.mrf.mxu0 }
 0x85c   : > { %v1222_v40 = vadd.f32 %v1217_v38, %v1062_v39  ;;  %v4607_v38 = vld [vmem:[%s5015_s21 + $0xc4] sm:$0xf0]  ;;  %v3847_v39 = vor.u32 %v4598_v32, %v3844_v36  ;;  %v3867_v36 = vor.u32 %v4609_v31, %v3866_v30  ;;  %v4610_v30 = vld [vmem:[%s5015_s21 + $0xdc] sm:$0xf0] }
 0x85e   : > { %1897 = vmatpush.bf16.msrb.mxu3 %v3847_v39  ;;  %v3794_v39 = vld [vmem:[%s5015_s21 + $0x10] sm:$0xf] }
 0x863   : > { %v1219_v45 = vpop.f32.mrf.mxu0 }
 0x864   : > { %v1223_v49 = vadd.f32 %v1219_v45, %v1064_v47  ;;  %v3778_v47 = vld [vmem:[%s5015_s21] sm:$0xf] }
 0x878   : > { %v1375_v42 = vpop.f32.mrf.mxu2 }
 0x879   : > { %v1380_v43 = vadd.f32 %v1375_v42, %v1222_v40  ;;  %v3851_v40 = vor.u32 %v4607_v38, %v3850_v37  ;;  %v3852_v42 = vld [vmem:[%s5015_s21 + $0xc8] sm:$0xf0]  ;;  %v4601_v37 = vld [vmem:[%s5015_s21 + $0x9c] sm:$0xf] }
 0x87a   : > { %v3868_v38 = vld [vmem:[%s5015_s21 + $0xd8] sm:$0xf0] }
 0x87b   : > { %v1386_v44 = vadd.f32 %v4797_v41, %v1380_v43  ;;  %1911 = vmatpush.bf16.msra.mxu1 %v3851_v40  ;;  %v3871_v40 = vor.u32 %v4601_v37, %v3868_v38  ;;  %v3882_v37 = vld [vmem:[%s5015_s21 + $0xa8] sm:$0xf] }
 0x87c   : > { %v4611_v38 = vld [vmem:[%s5015_s21 + $0xe4] sm:$0xf0] }
 0x87d   : > { %v1388_v48 = vadd.f32 %v1386_v44, %v5070_v21  ;;  %v1402_v21 = vadd.f32 %v4836_v57, %v1401_v55  ;;  %v3986_v55 = vld [vmem:[%s5015_s21 + $0x190] sm:$0xf] }
 0x87f   : > { %v1392_v50 = vsel %vm726_vm1, %v1388_v48, 0.0  ;;  %v5190_v60 = vsel %vm1403_vm4, %v4836_v57, %v1402_v21  ;;  %v4583_v57 = vld [vmem:[%s5015_s21 + $0xc] sm:$0xf]  ;;  %v4640_v21 = vld [vmem:[%s5015_s21 + $0x1cc] sm:$0xf0] }
 0x880   : > { %1393 = vadd.xlane.f32.xlu2 %v1392_v50  ;;  %v1377_v33 = vpop.f32.mrf.mxu2  ;;  %v3791_v59 = vor.u32 %v4583_v57, %v3788_v58 }
 0x881   : > { %v1381_v46 = vadd.f32 %v1377_v33, %v1223_v49  ;;  %v4582_v49 = vld [vmem:[%s5015_s21 + $0x4] sm:$0xf] }
 0x882   : > { %v3780_v33 = vld [vmem:[%s5015_s21 + $0x40] sm:$0xf0] }
 0x883   : > { %v1387_v51 = vadd.f32 %v4797_v41, %v1381_v46  ;;  %v4599_v41 = vld [vmem:[%s5015_s21 + $0x8c] sm:$0xf]  ;;  %v3786_v46 = vld [vmem:[%s5015_s21 + $0x8] sm:$0xf] }
 0x884   : > { %v3855_v44 = vor.u32 %v4599_v41, %v3852_v42  ;;  %v4592_v41 = vld [vmem:[%s5015_s21 + $0x4c] sm:$0xf0]  ;;  %v4584_v42 = vld [vmem:[%s5015_s21 + $0x14] sm:$0xf] }
 0x885   : > { %v1389_v53 = vadd.f32 %v1387_v51, %v5072_v24  ;;  %v4591_v51 = vld [vmem:[%s5015_s21 + $0x44] sm:$0xf0] }
 0x886   : > { %1925 = vmatpush.bf16.msrb.mxu2 %v3855_v44  ;;  %v3787_v56 = vor.u32 %v4591_v51, %v3786_v46 }
 0x887   : > { %v1395_v54 = vsel %vm726_vm1, %v1389_v53, 0.0 }
 0x888   : > { %1396 = vadd.xlane.f32.xlu0 %v1395_v54  ;;  %v3783_v54 = vor.u32 %v4582_v49, %v3780_v33  ;;  %1912 = vmatpush.bf16.msra.mxu1 %v3787_v56  ;;  %v4585_v49 = vld [vmem:[%s5015_s21 + $0x1c] sm:$0xf] }
 0x88a   : > { %1898 = vmatpush.bf16.msrb.mxu3 %v3783_v54  ;;  %1926 = vmatpush.bf16.msrb.mxu2 %v3791_v59 }
 0x88e   : > { %1979 = vmatpush.bf16.msra.mxu2 %v3999_v10 }
 0x892   : > { %1980 = vmatpush.bf16.msra.mxu2 %v3935_v52  ;;  %v4619_v52 = vld [vmem:[%s5015_s21 + $0x12c] sm:$0xf] }
 0x896   : > { %1981 = vmatpush.bf16.msra.mxu2 %v3871_v40  ;;  %v3884_v40 = vld [vmem:[%s5015_s21 + $0xe8] sm:$0xf0] }
 0x8f3   : > { %v1394_v61 = vpop.xlane.xlu2 %1393 }
 0x8f4   : > { %v1405_v24 = vmul.f32 %v5190_v60, %v1394_v61  ;;  %v4632_v61 = vld [vmem:[%s5015_s21 + $0x194] sm:$0xf] }
 0x8f6   : > { %v5193_v62 = vsub.f32 %v1388_v48, %v1405_v24  ;;  %v4590_v48 = vld [vmem:[%s5015_s21 + $0x3c] sm:$0xf0]  ;;  %v3987_v24 = vor.u32 %v4640_v21, %v3986_v55 }
 0x8f7   : > { %v3779_v50 = vor.u32 %v4590_v48, %v3778_v47  ;;  %v4593_v47 = vld [vmem:[%s5015_s21 + $0x54] sm:$0xf0]  ;;  %v3795_v48 = vor.u32 %v4592_v41, %v3794_v39  ;;  %v4603_v39 = vld [vmem:[%s5015_s21 + $0xac] sm:$0xf] }
 0x8f8   : > { %v1409_v63 = vmul.f32 %v5193_v62, %v5193_v62 }
 0x8f9   : > { %1884 = vmatpush.bf16.msra.mxu0 %v3779_v50  ;;  %v3804_v50 = vld [vmem:[%s5015_s21 + $0x58] sm:$0xf0] }
 0x8fa   : > { %v1411_v0 = vsel %vm726_vm1, %v1409_v63, 0.0  ;;  %v3988_v63 = vld [vmem:[%s5015_s21 + $0x1d0] sm:$0xf0]  ;;  %v3807_v56 = vor.u32 %v4585_v49, %v3804_v50  ;;  %v3812_v49 = vld [vmem:[%s5015_s21 + $0x60] sm:$0xf0] }
 0x8fb   : > { %1412 = vadd.xlane.f32.xlu1 %v1411_v0  ;;  %v1397_v1 = vpop.xlane.xlu0 %1396  ;;  %v3994_v0 = vld [vmem:[%s5015_s21 + $0x198] sm:$0xf]  ;;  %v3818_v50 = vld [vmem:[%s5015_s21 + $0x28] sm:$0xf] }
 0x8fc   : > { %v1406_v2 = vmul.f32 %v5190_v60, %v1397_v1  ;;  %v4641_v1 = vld [vmem:[%s5015_s21 + $0x1d4] sm:$0xf0]  ;;  %1982 = vmatpush.bf16.msra.mxu2 %v3807_v56 }
 0x8fd   : > { %1937 = vmatpush.bf16.msrb.mxu0 %v3987_v24 }
 0x8fe   : > { %v5199_v3 = vsub.f32 %v1389_v53, %v1406_v2 }
 0x900   : > { %v1410_v4 = vmul.f32 %v5199_v3, %v5199_v3 }
 0x901   : > { %1938 = vmatpush.bf16.msrb.mxu0 %v3923_v14 }
 0x902   : > { %v1414_v5 = vsel %vm726_vm1, %v1410_v4, 0.0  ;;  %v3991_v4 = vor.u32 %v4632_v61, %v3988_v63 }
 0x903   : > { %1415 = vadd.xlane.f32.xlu2 %v1414_v5  ;;  %v3995_v5 = vor.u32 %v4641_v1, %v3994_v0  ;;  %v4799_v1 = vld [vmem:[%s652_s26] ss:$0 sm:$0xff]  ;;  %s5643_s26 = sld [smem:[#allocation14_spill]] (!%p4560_p5) }
 0x904   : > { %1951 = vmatpush.bf16.msra.mxu3 %v3991_v4 }
 0x905   : > { %1965 = vmatpush.bf16.msrb.mxu1 %v3995_v5  ;;  %1939 = vmatpush.bf16.msrb.mxu0 %v3859_v29  ;;  %v3874_v29 = vld [vmem:[%s5015_s21 + $0xa0] sm:$0xf] }
 0x906   : > { %v3875_v41 = vor.u32 %v4610_v30, %v3874_v29  ;;  %v3826_v29 = vld [vmem:[%s5015_s21 + $0x30] sm:$0xf] }
 0x907   : > { %v4596_v30 = vld [vmem:[%s5015_s21 + $0x6c] sm:$0xf0] }
 0x908   : > { %1952 = vmatpush.bf16.msra.mxu3 %v3927_v15 }
 0x909   : > { %1966 = vmatpush.bf16.msrb.mxu1 %v3931_v22  ;;  %1940 = vmatpush.bf16.msrb.mxu0 %v3795_v48  ;;  %v4618_v22 = vld [vmem:[%s5015_s21 + $0x124] sm:$0xf] }
 0x90a   : > { %v3943_v28 = vor.u32 %v4618_v22, %v3940_v23  ;;  %v4586_v48 = vld [vmem:[%s5015_s21 + $0x24] sm:$0xf]  ;;  %v4604_v22 = vld [vmem:[%s5015_s21 + $0xb4] sm:$0xf] }
 0x90b   : > { %v3815_v56 = vor.u32 %v4586_v48, %v3812_v49  ;;  %v3892_v23 = vld [vmem:[%s5015_s21 + $0xf0] sm:$0xf0]  ;;  %v4661_v48 = vld [vmem:[%s5027_s17 + $0x78] sm:$0xff] }
 0x90c   : > { %1953 = vmatpush.bf16.msra.mxu3 %v3863_v34  ;;  %v4602_v34 = vld [vmem:[%s5015_s21 + $0xa4] sm:$0xf]  ;;  %v4677_v49 = vld [vmem:[%s5027_s17 + $0xf8] sm:$0xff] }
 0x90d   : > { %1967 = vmatpush.bf16.msrb.mxu1 %v3867_v36  ;;  %v3876_v36 = vld [vmem:[%s5015_s21 + $0xe0] sm:$0xf0] }
 0x96e   : > { %v1413_v43 = vpop.xlane.xlu1 %1412 }
 0x96f   : > { %v1417_v45 = vmul.f32 %v1413_v43, %v5190_v60  ;;  %v3796_v43 = vld [vmem:[%s5015_s21 + $0x50] sm:$0xf0] }
 0x970   : > { %v3799_v46 = vor.u32 %v4584_v42, %v3796_v43  ;;  %v3879_v42 = vor.u32 %v4602_v34, %v3876_v36  ;;  %v3810_v43 = vld [vmem:[%s5015_s21 + $0x20] sm:$0xf]  ;;  %v4588_v34 = vld [vmem:[%s5015_s21 + $0x34] sm:$0xf] }
 0x971   : > { %v5235_v53 = vadd.f32 1e-05, %v1417_v45  ;;  %v3802_v45 = vld [vmem:[%s5015_s21 + $0x18] sm:$0xf]  ;;  %v3828_v36 = vld [vmem:[%s5015_s21 + $0x70] sm:$0xf0] }
 0x972   : > { %v3803_v51 = vor.u32 %v4593_v47, %v3802_v45  ;;  %1954 = vmatpush.bf16.msra.mxu3 %v3799_v46  ;;  %v3883_v45 = vor.u32 %v4611_v38, %v3882_v37  ;;  %v3887_v47 = vor.u32 %v4603_v39, %v3884_v40  ;;  %v4587_v46 = vld [vmem:[%s5015_s21 + $0x2c] sm:$0xf]  ;;  %v3834_v37 = vld [vmem:[%s5015_s21 + $0x38] sm:$0xf]  ;;  %v4589_v39 = vld [vmem:[%s5015_s21 + $0x3c] sm:$0xf] }
 0x973   : > { %4837 = vrsqrt.f32 %v5235_v53  ;;  %vm1427_vm6 = vweird.f32 %v5235_v53  ;;  %v4597_v38 = vld [vmem:[%s5015_s21 + $0x74] sm:$0xf0]  ;;  %v3836_v40 = vld [vmem:[%s5015_s21 + $0x78] sm:$0xf0] }
 0x974   : > { %1968 = vmatpush.bf16.msrb.mxu1 %v3803_v51  ;;  %v3820_v51 = vld [vmem:[%s5015_s21 + $0x68] sm:$0xf0] }
 0x976   : > { %v1416_v2 = vpop.xlane.xlu2 %1415 }
 0x977   : > { %v1418_v9 = vmul.f32 %v1416_v2, %v5190_v60 }
 0x979   : > { %v4838_v19 = vpop.eup %4837  ;;  %v1420_v20 = vadd.f32 1e-05, %v1418_v9  ;;  %v4010_v9 = vld [vmem:[%s5015_s21 + $0x1a8] sm:$0xf] }
 0x97a   : > { %v1422_v35 = vmul.f32 %v4838_v19, %v5235_v53  ;;  %vm1428_vm5 = vweird.f32 %v4838_v19  ;;  %v4798_v53 = vld [vmem:[%s649_s13] ss:$0 sm:$0xff] }
 0x97b   : > { %4839 = vrsqrt.f32 %v1420_v20  ;;  %vm1429_vm7 = vmor %vm1427_vm6, %vm1428_vm5  ;;  %vm1437_vm9 = vweird.f32 %v1420_v20 }
 0x97c   : > { %v1423_v32 = vmul.f32 %v4838_v19, %v1422_v35  ;;  %v4627_v35 = vld [vmem:[%s5015_s21 + $0x164] sm:$0xf0] }
 0x97d   : > { %v3947_v31 = vor.u32 %v4627_v35, %v3946_v25  ;;  %v3898_v25 = vld [vmem:[%s5015_s21 + $0xb8] sm:$0xf] }
 0x97e   : > { %v1424_v44 = vmul.f32 0.5, %v1423_v32  ;;  %v3951_v32 = vor.u32 %v4619_v52, %v3948_v26  ;;  %v4613_v35 = vld [vmem:[%s5015_s21 + $0xf4] sm:$0xf0]  ;;  %v4605_v52 = vld [vmem:[%s5015_s21 + $0xbc] sm:$0xf] }
 0x97f   : > { %v3900_v26 = vld [vmem:[%s5015_s21 + $0xf8] sm:$0xf0] }
 0x980   : > { %v1425_v33 = vsub.f32 1.5, %v1424_v44  ;;  %v4594_v44 = vld [vmem:[%s5015_s21 + $0x5c] sm:$0xf0] }
 0x981   : > { %v4840_v54 = vpop.eup %4839 }
 0x982   : > { %v1426_v57 = vmul.f32 %v4838_v19, %v1425_v33  ;;  %v1432_v58 = vmul.f32 %v4840_v54, %v1420_v20  ;;  %vm1438_vm8 = vweird.f32 %v4840_v54  ;;  %v4595_v33 = vld [vmem:[%s5015_s21 + $0x64] sm:$0xf0] }
 0x983   : > { %vm1439_vm10 = vmor %vm1437_vm9, %vm1438_vm8 }
 0x984   : > { %v1433_v59 = vmul.f32 %v4840_v54, %v1432_v58  ;;  %v1430_v55 = vsel %vm1429_vm7, %v4838_v19, %v1426_v57  ;;  %v4011_v19 = vor.u32 %v4643_v12, %v4010_v9  ;;  %v4018_v57 = vld [vmem:[%s5015_s21 + $0x1b0] sm:$0xf]  ;;  %v3962_v9 = vld [vmem:[%s5015_s21 + $0x138] sm:$0xf] }
 0x985   : > { %v1441_v24 = vmul.f32 %v1430_v55, %v5193_v62  ;;  %v4642_v62 = vld [vmem:[%s5015_s21 + $0x1dc] sm:$0xf0]  ;;  %v4644_v58 = vld [vmem:[%s5015_s21 + $0x1ec] sm:$0xf0]  ;;  %v3823_v55 = vor.u32 %v4587_v46, %v3820_v51  ;;  %v4629_v12 = vld [vmem:[%s5015_s21 + $0x174] sm:$0xf0] }
 0x986   : > { %v1434_v21 = vmul.f32 0.5, %v1433_v59  ;;  %v4003_v15 = vor.u32 %v4642_v62, %v4002_v6  ;;  %v3819_v59 = vor.u32 %v4595_v33, %v3818_v50  ;;  %v4652_v50 = vld [vmem:[%s5027_s17 + $0x30] sm:$0xff] }
 0x987   : > { %v1446_v2 = vmul.f32 %v4798_v53, %v1441_v24  ;;  %v4645_v24 = vld [vmem:[%s5015_s21 + $0x1f4] sm:$0xf0]  ;;  %v4668_v33 = vld [vmem:[%s5027_s17 + $0xb0] sm:$0xff] }
 0x988   : > { %v1435_v61 = vsub.f32 1.5, %v1434_v21  ;;  %v4636_v21 = vld [vmem:[%s5015_s21 + $0x1b4] sm:$0xf] }
 0x989   : > { %v5292_v10 = vadd.f32 %v4799_v1, %v1446_v2  ;;  %v4660_v46 = vld [vmem:[%s5027_s17 + $0x70] sm:$0xff] }
 0x98a   : > { %v1436_v63 = vmul.f32 %v4840_v54, %v1435_v61  ;;  %v4020_v61 = vld [vmem:[%s5015_s21 + $0x1f0] sm:$0xf0] }
 0x98b   : > { %v4023_v2 = vor.u32 %v4636_v21, %v4020_v61  ;;  %v4676_v51 = vld [vmem:[%s5027_s17 + $0xf0] sm:$0xff]  ;;  %v4658_v21 = vld [vmem:[%s5027_s17 + $0x60] sm:$0xff] }
 0x98c   : > { %v1440_v0 = vsel %vm1439_vm10, %v4840_v54, %v1436_v63  ;;  %v3811_v54 = vor.u32 %v4594_v44, %v3810_v43  ;;  %v4637_v63 = vld [vmem:[%s5015_s21 + $0x1bc] sm:$0xf]  ;;  %v3835_v43 = vor.u32 %v4597_v38, %v3834_v37  ;;  %v3839_v44 = vor.u32 %v4589_v39, %v3836_v40  ;;  %v4674_v61 = vld [vmem:[%s5027_s17 + $0xe0] sm:$0xff]  ;;  %v4679_v38 = vld [vmem:[%s5027_s17 + $0x108] sm:$0xff] }
 0x98d   : > { %v1442_v4 = vmul.f32 %v1440_v0, %v5199_v3  ;;  %v4012_v3 = vld [vmem:[%s5015_s21 + $0x1e8] sm:$0xf0]  ;;  %v4028_v0 = vld [vmem:[%s5015_s21 + $0x1f8] sm:$0xf0]  ;;  %v4688_v40 = vld [vmem:[%s5027_s17 + $0x150] sm:$0xff] }
 0x98e   : > { %v4015_v20 = vor.u32 %v4635_v13, %v4012_v3  ;;  %v4031_v62 = vor.u32 %v4637_v63, %v4028_v0  ;;  %v4621_v13 = vld [vmem:[%s5015_s21 + $0x13c] sm:$0xf]  ;;  %v4695_v39 = vld [vmem:[%s5027_s17 + $0x188] sm:$0xff] }
 0x98f   : > { %v1447_v5 = vmul.f32 %v4798_v53, %v1442_v4  ;;  %v4026_v53 = vld [vmem:[%s5015_s21 + $0x1b8] sm:$0xf]  ;;  %v3954_v4 = vld [vmem:[%s5015_s21 + $0x130] sm:$0xf]  ;;  %v3964_v3 = vld [vmem:[%s5015_s21 + $0x178] sm:$0xf0] }
 0x990   : > { %v4027_v6 = vor.u32 %v4645_v24, %v4026_v53  ;;  %v4649_v53 = vld [vmem:[%s5027_s17 + $0x18] sm:$0xff] }
 0x991   : > { %v5294_v11 = vadd.f32 %v4799_v1, %v1447_v5  ;;  %v4019_v1 = vor.u32 %v4644_v58, %v4018_v57  ;;  %v4628_v5 = vld [vmem:[%s5015_s21 + $0x16c] sm:$0xf0]  ;;  %v4659_v57 = vld [vmem:[%s5027_s17 + $0x68] sm:$0xff]  ;;  %v4665_v24 = vld [vmem:[%s5027_s17 + $0x98] sm:$0xff]  ;;  %s5641_s21 = sld [smem:[#allocation7_spill]] }
 0x992   : > { %v4675_v58 = vld [vmem:[%s5027_s17 + $0xe8] sm:$0xff]  ;;  %v4657_v63 = vld [vmem:[%s5027_s17 + $0x58] sm:$0xff] }
 0x993   : > { %v5301_v14 = vpack.c.bf16 %v5294_v11, %v5292_v10  ;;  %v4673_v0 = vld [vmem:[%s5027_s17 + $0xd8] sm:$0xff] }
 0x994   : > { %v4705_v37 = vld [vmem:[%s5027_s17 + $0x1d8] sm:$0xff] }
 0x995   : > { %4032 = vmatmul.msk.bf16.vlgmr.msra.gmra.mxu0 %vm726_vm1, %v5301_v14  ;;  %4033 = vmatmul.msk.bf16.vlgmr.msrb.gmra.mxu3 %vm726_vm1, %v5301_v14 }
 0x996   : > { %4034 = vmatmul.msk.bf16.vlgmr.msra.gmra.mxu1 %vm726_vm1, %v5301_v14  ;;  %4035 = vmatmul.msk.bf16.vlgmr.msrb.gmra.mxu2 %vm726_vm1, %v5301_v14 }
 0x997   : > { %1993 = vmatpush.bf16.msra.mxu0 %v4003_v15  ;;  %2007 = vmatpush.bf16.msrb.mxu3 %v4007_v16  ;;  %v3955_v15 = vor.u32 %v4628_v5, %v3954_v4  ;;  %v3959_v16 = vor.u32 %v4620_v7, %v3956_v8  ;;  %v4656_v4 = vld [vmem:[%s5027_s17 + $0x50] sm:$0xff]  ;;  %v4671_v7 = vld [vmem:[%s5027_s17 + $0xc8] sm:$0xff]  ;;  %v4646_v8 = vld [vmem:[%s5027_s17] sm:$0xff] }
 0x998   : > { %2021 = vmatpush.bf16.msra.mxu1 %v4011_v19  ;;  %2035 = vmatpush.bf16.msrb.mxu2 %v4015_v20  ;;  %v3963_v19 = vor.u32 %v4629_v12, %v3962_v9  ;;  %v3967_v20 = vor.u32 %v4621_v13, %v3964_v3  ;;  %v4672_v5 = vld [vmem:[%s5027_s17 + $0xd0] sm:$0xff]  ;;  %v4662_v9 = vld [vmem:[%s5027_s17 + $0x80] sm:$0xff]  ;;  %v4685_v12 = vld [vmem:[%s5027_s17 + $0x138] sm:$0xff] }
 0x999   : > { %v4701_v13 = vld [vmem:[%s5027_s17 + $0x1b8] sm:$0xff]  ;;  %v4654_v3 = vld [vmem:[%s5027_s17 + $0x40] sm:$0xff] }
 0x99b   : > { %1994 = vmatpush.bf16.msra.mxu0 %v3939_v27  ;;  %2008 = vmatpush.bf16.msrb.mxu3 %v3943_v28  ;;  %v3891_v27 = vor.u32 %v4612_v18, %v3890_v17  ;;  %v3895_v28 = vor.u32 %v4604_v22, %v3892_v23  ;;  %v4709_v17 = vld [vmem:[%s5027_s17 + $0x1f8] sm:$0xff]  ;;  %v4684_v18 = vld [vmem:[%s5027_s17 + $0x130] sm:$0xff]  ;;  %v4683_v23 = vld [vmem:[%s5027_s17 + $0x128] sm:$0xff] }
 0x99c   : > { %2022 = vmatpush.bf16.msra.mxu1 %v3947_v31  ;;  %2036 = vmatpush.bf16.msrb.mxu2 %v3951_v32  ;;  %v3899_v31 = vor.u32 %v4613_v35, %v3898_v25  ;;  %v3903_v32 = vor.u32 %v4605_v52, %v3900_v26  ;;  %v4708_v22 = vld [vmem:[%s5027_s17 + $0x1f0] sm:$0xff]  ;;  %v4699_v25 = vld [vmem:[%s5027_s17 + $0x1a8] sm:$0xff]  ;;  %v4682_v35 = vld [vmem:[%s5027_s17 + $0x120] sm:$0xff] }
 0x99d   : > { %v4698_v52 = vld [vmem:[%s5027_s17 + $0x1a0] sm:$0xff]  ;;  %v4691_v26 = vld [vmem:[%s5027_s17 + $0x168] sm:$0xff] }
 0x99f   : > { %1995 = vmatpush.bf16.msra.mxu0 %v3875_v41  ;;  %2009 = vmatpush.bf16.msrb.mxu3 %v3879_v42  ;;  %v3827_v41 = vor.u32 %v4596_v30, %v3826_v29  ;;  %v3831_v42 = vor.u32 %v4588_v34, %v3828_v36  ;;  %v4697_v29 = vld [vmem:[%s5027_s17 + $0x198] sm:$0xff]  ;;  %v4690_v30 = vld [vmem:[%s5027_s17 + $0x160] sm:$0xff]  ;;  %v4696_v34 = vld [vmem:[%s5027_s17 + $0x190] sm:$0xff] }
 0x9a0   : > { %2023 = vmatpush.bf16.msra.mxu1 %v3883_v45  ;;  %2037 = vmatpush.bf16.msrb.mxu2 %v3887_v47  ;;  %v4653_v45 = vld [vmem:[%s5027_s17 + $0x38] sm:$0xff] }
 0x9a1   : > { %v4669_v47 = vld [vmem:[%s5027_s17 + $0xb8] sm:$0xff] }
 0x9a2   : > { %v4689_v36 = vld [vmem:[%s5027_s17 + $0x158] sm:$0xff] }
 0x9a3   : > { %1996 = vmatpush.bf16.msra.mxu0 %v3811_v54  ;;  %2010 = vmatpush.bf16.msrb.mxu3 %v3815_v56  ;;  %v4651_v54 = vld [vmem:[%s5027_s17 + $0x28] sm:$0xff] }
 0x9a4   : > { %2024 = vmatpush.bf16.msra.mxu1 %v3819_v59  ;;  %2038 = vmatpush.bf16.msrb.mxu2 %v3823_v55  ;;  %v4667_v56 = vld [vmem:[%s5027_s17 + $0xa8] sm:$0xff]  ;;  %v4650_v59 = vld [vmem:[%s5027_s17 + $0x20] sm:$0xff] }
 0x9a5   : > { %4036 = vmatmul.msk.bf16.vlgmr.msrb.gmra.mxu0 %vm726_vm1, %v5301_v14  ;;  %4037 = vmatmul.msk.bf16.vlgmr.msra.gmra.mxu3 %vm726_vm1, %v5301_v14  ;;  %v4666_v55 = vld [vmem:[%s5027_s17 + $0xa0] sm:$0xff] }
 0x9a6   : > { %4038 = vmatmul.msk.bf16.vlgmr.msrb.gmra.mxu1 %vm726_vm1, %v5301_v14  ;;  %4039 = vmatmul.msk.bf16.vlgmr.msra.gmra.mxu2 %vm726_vm1, %v5301_v14 }
 0x9a7   : > { %2049 = vmatpush.bf16.msrb.mxu0 %v4019_v1  ;;  %2063 = vmatpush.bf16.msra.mxu3 %v4023_v2  ;;  %v4648_v1 = vld [vmem:[%s5027_s17 + $0x10] sm:$0xff] }
 0x9a8   : > { %2077 = vmatpush.bf16.msrb.mxu1 %v4027_v6  ;;  %2091 = vmatpush.bf16.msra.mxu2 %v4031_v62  ;;  %v4664_v2 = vld [vmem:[%s5027_s17 + $0x90] sm:$0xff]  ;;  %v4647_v6 = vld [vmem:[%s5027_s17 + $0x8] sm:$0xff] }
 0x9a9   : > { %v4655_v62 = vld [vmem:[%s5027_s17 + $0x48] sm:$0xff] }
 0x9ab   : > { %2050 = vmatpush.bf16.msrb.mxu0 %v3955_v15  ;;  %2064 = vmatpush.bf16.msra.mxu3 %v3959_v16  ;;  %v4670_v15 = vld [vmem:[%s5027_s17 + $0xc0] sm:$0xff]  ;;  %v4693_v16 = vld [vmem:[%s5027_s17 + $0x178] sm:$0xff] }
 0x9ac   : > { %2078 = vmatpush.bf16.msrb.mxu1 %v3963_v19  ;;  %2092 = vmatpush.bf16.msra.mxu2 %v3967_v20  ;;  %v4700_v19 = vld [vmem:[%s5027_s17 + $0x1b0] sm:$0xff] }
 0x9ad   : > { %v4692_v20 = vld [vmem:[%s5027_s17 + $0x170] sm:$0xff] }
 0x9af   : > { %2051 = vmatpush.bf16.msrb.mxu0 %v3891_v27  ;;  %2065 = vmatpush.bf16.msra.mxu3 %v3895_v28  ;;  %v4707_v27 = vld [vmem:[%s5027_s17 + $0x1e8] sm:$0xff]  ;;  %v4681_v28 = vld [vmem:[%s5027_s17 + $0x118] sm:$0xff] }
 0x9b0   : > { %2079 = vmatpush.bf16.msrb.mxu1 %v3899_v31  ;;  %2093 = vmatpush.bf16.msra.mxu2 %v3903_v32  ;;  %v4706_v31 = vld [vmem:[%s5027_s17 + $0x1e0] sm:$0xff]  ;;  %v4680_v32 = vld [vmem:[%s5027_s17 + $0x110] sm:$0xff] }
 0x9b3   : > { %2052 = vmatpush.bf16.msrb.mxu0 %v3827_v41  ;;  %2066 = vmatpush.bf16.msra.mxu3 %v3831_v42  ;;  %v4704_v41 = vld [vmem:[%s5027_s17 + $0x1d0] sm:$0xff]  ;;  %v4678_v42 = vld [vmem:[%s5027_s17 + $0x100] sm:$0xff] }
 0x9b4   : > { %2080 = vmatpush.bf16.msrb.mxu1 %v3835_v43  ;;  %2094 = vmatpush.bf16.msra.mxu2 %v3839_v44  ;;  %v4694_v43 = vld [vmem:[%s5027_s17 + $0x180] sm:$0xff]  ;;  %v4687_v44 = vld [vmem:[%s5027_s17 + $0x148] sm:$0xff] }
 0x9b5   : > { %4040 = vmatmul.msk.bf16.vlgmr.msra.gmra.mxu0 %vm726_vm1, %v5301_v14  ;;  %4041 = vmatmul.msk.bf16.vlgmr.msrb.gmra.mxu3 %vm726_vm1, %v5301_v14 }
 0x9b6   : > { %4042 = vmatmul.msk.bf16.vlgmr.msra.gmra.mxu1 %vm726_vm1, %v5301_v14  ;;  %4043 = vmatmul.msk.bf16.vlgmr.msrb.gmra.mxu2 %vm726_vm1, %v5301_v14 }
 0x9b7   : > { %3177 = vmatpush.bf16.msra.mxu0 %v4653_v45  ;;  %3191 = vmatpush.bf16.msrb.mxu3 %v4661_v48  ;;  %v4703_v45 = vld [vmem:[%s5027_s17 + $0x1c8] sm:$0xff]  ;;  %v4702_v48 = vld [vmem:[%s5027_s17 + $0x1c0] sm:$0xff] }
 0x9b8   : > { %3205 = vmatpush.bf16.msra.mxu1 %v4669_v47  ;;  %3219 = vmatpush.bf16.msrb.mxu2 %v4677_v49  ;;  %v4686_v47 = vld [vmem:[%s5027_s17 + $0x140] sm:$0xff] }
 0x9b9   : > { %v5456_v49 = vld [vmem:[%s5641_s21] sm:$0xff] }
 0x9bb   : > { %3178 = vmatpush.bf16.msra.mxu0 %v4652_v50  ;;  %3192 = vmatpush.bf16.msrb.mxu3 %v4660_v46  ;;  %v1522_v46 = vperm.slane %v5456_v49, 0 }
 0x9bc   : > { %3206 = vmatpush.bf16.msra.mxu1 %v4668_v33  ;;  %3220 = vmatpush.bf16.msrb.mxu2 %v4676_v51  ;;  %v1524_v51 = vperm.slane %v5456_v49, 2 }
 0x9bf   : > { %3179 = vmatpush.bf16.msra.mxu0 %v4651_v54  ;;  %3193 = vmatpush.bf16.msrb.mxu3 %v4659_v57 }
 0x9c0   : > { %3207 = vmatpush.bf16.msra.mxu1 %v4667_v56  ;;  %3221 = vmatpush.bf16.msrb.mxu2 %v4675_v58 }
 0x9c3   : > { %3180 = vmatpush.bf16.msra.mxu0 %v4650_v59  ;;  %3194 = vmatpush.bf16.msrb.mxu3 %v4658_v21 }
 0x9c4   : > { %3208 = vmatpush.bf16.msra.mxu1 %v4666_v55  ;;  %3222 = vmatpush.bf16.msrb.mxu2 %v4674_v61  ;;  %v1523_v55 = vperm.slane %v5456_v49, 1 }
 0x9c5   : > { %4044 = vmatmul.msk.bf16.vlgmr.msrb.gmra.mxu0 %vm726_vm1, %v5301_v14  ;;  %4045 = vmatmul.msk.bf16.vlgmr.msra.gmra.mxu3 %vm726_vm1, %v5301_v14 }
 0x9c6   : > { %4046 = vmatmul.msk.bf16.vlgmr.msrb.gmra.mxu1 %vm726_vm1, %v5301_v14  ;;  %4047 = vmatmul.msk.bf16.vlgmr.msra.gmra.mxu2 %vm726_vm1, %v5301_v14  ;;  %v4663_v14 = vld [vmem:[%s5027_s17 + $0x88] sm:$0xff] }
 0x9c7   : > { %3181 = vmatpush.bf16.msra.mxu0 %v4649_v53  ;;  %3195 = vmatpush.bf16.msrb.mxu3 %v4657_v63  ;;  %v1525_v53 = vperm.slane %v5456_v49, 3 }
 0x9c8   : > { %3209 = vmatpush.bf16.msra.mxu1 %v4665_v24  ;;  %3223 = vmatpush.bf16.msrb.mxu2 %v4673_v0 }
 0x9cb   : > { %3182 = vmatpush.bf16.msra.mxu0 %v4648_v1  ;;  %3196 = vmatpush.bf16.msrb.mxu3 %v4656_v4  ;;  %v4717_v4 = vld [vmem:[%s5027_s17 + $0x238] sm:$0xff] }
 0x9cc   : > { %3210 = vmatpush.bf16.msra.mxu1 %v4664_v2  ;;  %3224 = vmatpush.bf16.msrb.mxu2 %v4672_v5 }
 0x9cf   : > { %3183 = vmatpush.bf16.msra.mxu0 %v4647_v6  ;;  %3197 = vmatpush.bf16.msrb.mxu3 %v4655_v62 }
 0x9d0   : > { %3211 = vmatpush.bf16.msra.mxu1 %v4663_v14  ;;  %3225 = vmatpush.bf16.msrb.mxu2 %v4671_v7  ;;  %v4733_v14 = vld [vmem:[%s5027_s17 + $0x2b8] sm:$0xff] }
 0x9d3   : > { %3184 = vmatpush.bf16.msra.mxu0 %v4646_v8  ;;  %3198 = vmatpush.bf16.msrb.mxu3 %v4654_v3 }
 0x9d4   : > { %3212 = vmatpush.bf16.msra.mxu1 %v4662_v9  ;;  %3226 = vmatpush.bf16.msrb.mxu2 %v4670_v15  ;;  %v4716_v15 = vld [vmem:[%s5027_s17 + $0x230] sm:$0xff] }
 0x9d7   : > { %3233 = vmatpush.bf16.msrb.mxu0 %v4685_v12  ;;  %3247 = vmatpush.bf16.msra.mxu3 %v4693_v16 }
 0x9d8   : > { %3261 = vmatpush.bf16.msrb.mxu1 %v4701_v13  ;;  %3275 = vmatpush.bf16.msra.mxu2 %v4709_v17 }
 0x9db   : > { %3234 = vmatpush.bf16.msrb.mxu0 %v4684_v18  ;;  %3248 = vmatpush.bf16.msra.mxu3 %v4692_v20 }
 0x9dc   : > { %3262 = vmatpush.bf16.msrb.mxu1 %v4700_v19  ;;  %3276 = vmatpush.bf16.msra.mxu2 %v4708_v22  ;;  %v4732_v19 = vld [vmem:[%s5027_s17 + $0x2b0] sm:$0xff] }
 0x9df   : > { %3235 = vmatpush.bf16.msrb.mxu0 %v4683_v23  ;;  %3249 = vmatpush.bf16.msra.mxu3 %v4691_v26  ;;  %v4725_v23 = vld [vmem:[%s5027_s17 + $0x278] sm:$0xff] }
 0x9e0   : > { %3263 = vmatpush.bf16.msrb.mxu1 %v4699_v25  ;;  %3277 = vmatpush.bf16.msra.mxu2 %v4707_v27  ;;  %v1528_v27 = vperm.slane %v5456_v49, 6 }
 0x9e3   : > { %3236 = vmatpush.bf16.msrb.mxu0 %v4682_v35  ;;  %3250 = vmatpush.bf16.msra.mxu3 %v4690_v30  ;;  %v1526_v35 = vperm.slane %v5456_v49, 4 }
 0x9e4   : > { %3264 = vmatpush.bf16.msrb.mxu1 %v4698_v52  ;;  %3278 = vmatpush.bf16.msra.mxu2 %v4706_v31  ;;  %v4741_v52 = vld [vmem:[%s5027_s17 + $0x2f8] sm:$0xff]  ;;  %v4724_v31 = vld [vmem:[%s5027_s17 + $0x270] sm:$0xff] }
 0x9e7   : > { %3237 = vmatpush.bf16.msrb.mxu0 %v4681_v28  ;;  %3251 = vmatpush.bf16.msra.mxu3 %v4689_v36  ;;  %v4715_v28 = vld [vmem:[%s5027_s17 + $0x228] sm:$0xff]  ;;  %v4740_v36 = vld [vmem:[%s5027_s17 + $0x2f0] sm:$0xff] }
 0x9e8   : > { %3265 = vmatpush.bf16.msrb.mxu1 %v4697_v29  ;;  %3279 = vmatpush.bf16.msra.mxu2 %v4705_v37  ;;  %v4731_v29 = vld [vmem:[%s5027_s17 + $0x2a8] sm:$0xff] }
 0x9eb   : > { %3238 = vmatpush.bf16.msrb.mxu0 %v4680_v32  ;;  %3252 = vmatpush.bf16.msra.mxu3 %v4688_v40  ;;  %v1527_v40 = vperm.slane %v5456_v49, 5 }
 0x9ec   : > { %3266 = vmatpush.bf16.msrb.mxu1 %v4696_v34  ;;  %3280 = vmatpush.bf16.msra.mxu2 %v4704_v41 }
 0x9ef   : > { %3239 = vmatpush.bf16.msrb.mxu0 %v4679_v38  ;;  %3253 = vmatpush.bf16.msra.mxu3 %v4687_v44  ;;  %v1529_v44 = vperm.slane %v5456_v49, 7 }
 0x9f0   : > { %3267 = vmatpush.bf16.msrb.mxu1 %v4695_v39  ;;  %3281 = vmatpush.bf16.msra.mxu2 %v4703_v45  ;;  %v4714_v39 = vld [vmem:[%s5027_s17 + $0x220] sm:$0xff] }
 0x9f3   : > { %3240 = vmatpush.bf16.msrb.mxu0 %v4678_v42  ;;  %3254 = vmatpush.bf16.msra.mxu3 %v4686_v47  ;;  %v4723_v47 = vld [vmem:[%s5027_s17 + $0x268] sm:$0xff] }
 0x9f4   : > { %3268 = vmatpush.bf16.msrb.mxu1 %v4694_v43  ;;  %3282 = vmatpush.bf16.msra.mxu2 %v4702_v48  ;;  %v4730_v43 = vld [vmem:[%s5027_s17 + $0x2a0] sm:$0xff] }
 0xa12   : > { %v1886_v50 = vpop.f32.mrf.mxu0 }
 0xa13   : > { %v1914_v33 = vpop.f32.mrf.mxu1  ;;  %v1887_v56 = vadd.f32 %v1886_v50, %v1522_v46 }
 0xa14   : > { %v1915_v58 = vadd.f32 %v1914_v33, %v1524_v51  ;;  %v4739_v33 = vld [vmem:[%s5027_s17 + $0x2e8] sm:$0xff] }
 0xa15   : > { %v2101_v63 = vmax.f32 %v1887_v56, 0.0 }
 0xa16   : > { %v2103_v1 = vmax.f32 %v1915_v58, 0.0  ;;  %v4729_v58 = vld [vmem:[%s5027_s17 + $0x298] sm:$0xff] }
 0xa18   : > { %v1900_v54 = vpop.f32.mrf.mxu3 }
 0xa19   : > { %v1928_v57 = vpop.f32.mrf.mxu2  ;;  %v1901_v5 = vadd.f32 %v1900_v54, %v1523_v55  ;;  %v4713_v54 = vld [vmem:[%s5027_s17 + $0x218] sm:$0xff] }
 0xa1a   : > { %v1888_v59 = vpop.f32.mrf.mxu0  ;;  %v1929_v62 = vadd.f32 %v1928_v57, %v1525_v53 }
 0xa1b   : > { %v1889_v21 = vadd.f32 %v1888_v59, %v1522_v46  ;;  %v1916_v61 = vpop.f32.mrf.mxu1  ;;  %v2102_v16 = vmax.f32 %v1901_v5, 0.0 }
 0xa1c   : > { %v1917_v24 = vadd.f32 %v1916_v61, %v1524_v51  ;;  %v2104_v20 = vmax.f32 %v1929_v62, 0.0 }
 0xa1d   : > { %v2117_v0 = vmax.f32 %v1889_v21, 0.0  ;;  %v4722_v21 = vld [vmem:[%s5027_s17 + $0x260] sm:$0xff] }
 0xa1e   : > { %v2119_v2 = vmax.f32 %v1917_v24, 0.0  ;;  %v4738_v24 = vld [vmem:[%s5027_s17 + $0x2e0] sm:$0xff] }
 0xa1f   : > { %v2133_v6 = vpack.c.bf16 %v2117_v0, %v2101_v63  ;;  %v5485_v0 = vld [vmem:[%s5641_s21 + $0x8] sm:$0xff] }
 0xa20   : > { %v2135_v7 = vpack.c.bf16 %v2119_v2, %v2103_v1  ;;  %v1902_v8 = vpop.f32.mrf.mxu3  ;;  %v4712_v2 = vld [vmem:[%s5027_s17 + $0x210] sm:$0xff] }
 0xa21   : > { %v1903_v9 = vadd.f32 %v1902_v8, %v1523_v55  ;;  %v1930_v12 = vpop.f32.mrf.mxu2  ;;  %3185 = vmatmul.bf16.vlgmr.msra.gmra.mxu0 %v2133_v6  ;;  %v4721_v8 = vld [vmem:[%s5027_s17 + $0x258] sm:$0xff] }
 0xa22   : > { %v1931_v13 = vadd.f32 %v1930_v12, %v1525_v53  ;;  %3213 = vmatmul.bf16.vlgmr.msra.gmra.mxu1 %v2135_v7  ;;  %3289 = vmatpush.bf16.msra.mxu0 %v4717_v4  ;;  %v1942_v3 = vpop.f32.mrf.mxu0  ;;  %v1530_v12 = vperm.slane %v5485_v0, 0 }
 0xa23   : > { %v2118_v17 = vmax.f32 %v1903_v9, 0.0  ;;  %3317 = vmatpush.bf16.msra.mxu1 %v4733_v14  ;;  %v1970_v18 = vpop.f32.mrf.mxu1  ;;  %v1943_v32 = vadd.f32 %v1942_v3, %v1526_v35  ;;  %v4728_v14 = vld [vmem:[%s5027_s17 + $0x290] sm:$0xff] }
 0xa24   : > { %v2120_v22 = vmax.f32 %v1931_v13, 0.0  ;;  %v1971_v37 = vadd.f32 %v1970_v18, %v1528_v27  ;;  %v4737_v13 = vld [vmem:[%s5027_s17 + $0x2d8] sm:$0xff] }
 0xa25   : > { %v2134_v25 = vpack.c.bf16 %v2118_v17, %v2102_v16  ;;  %v2105_v48 = vmax.f32 %v1943_v32, 0.0  ;;  %v4711_v16 = vld [vmem:[%s5027_s17 + $0x208] sm:$0xff] }
 0xa26   : > { %v2136_v26 = vpack.c.bf16 %v2120_v22, %v2104_v20  ;;  %3290 = vmatpush.bf16.msra.mxu0 %v4716_v15  ;;  %v2107_v46 = vmax.f32 %v1971_v37, 0.0  ;;  %v1532_v15 = vperm.slane %v5485_v0, 2  ;;  %v4727_v17 = vld [vmem:[%s5027_s17 + $0x288] sm:$0xff] }
 0xa27   : > { %3318 = vmatpush.bf16.msra.mxu1 %v4732_v19  ;;  %3199 = vmatmul.bf16.vlgmr.msrb.gmra.mxu3 %v2134_v25  ;;  %v4720_v19 = vld [vmem:[%s5027_s17 + $0x250] sm:$0xff] }
 0xa28   : > { %3227 = vmatmul.bf16.vlgmr.msrb.gmra.mxu2 %v2136_v26  ;;  %3303 = vmatpush.bf16.msrb.mxu3 %v4725_v23  ;;  %v1956_v30 = vpop.f32.mrf.mxu3  ;;  %v4736_v23 = vld [vmem:[%s5027_s17 + $0x2d0] sm:$0xff]  ;;  %v1531_v26 = vperm.slane %v5485_v0, 1 }
 0xa29   : > { %3331 = vmatpush.bf16.msrb.mxu2 %v4741_v52  ;;  %v1984_v34 = vpop.f32.mrf.mxu2  ;;  %v1957_v56 = vadd.f32 %v1956_v30, %v1527_v40  ;;  %v4710_v52 = vld [vmem:[%s5027_s17 + $0x200] sm:$0xff]  ;;  %v4749_v30 = vld [vmem:[%s5027_s17 + $0x338] sm:$0xff] }
 0xa2a   : > { %3291 = vmatpush.bf16.msra.mxu0 %v4715_v28  ;;  %v1944_v38 = vpop.f32.mrf.mxu0  ;;  %v1985_v49 = vadd.f32 %v1984_v34, %v1529_v44  ;;  %v4765_v34 = vld [vmem:[%s5027_s17 + $0x3b8] sm:$0xff] }
 0xa2b   : > { %3319 = vmatpush.bf16.msra.mxu1 %v4731_v29  ;;  %v1945_v41 = vadd.f32 %v1944_v38, %v1526_v35  ;;  %v1972_v42 = vpop.f32.mrf.mxu1  ;;  %v2106_v4 = vmax.f32 %v1957_v56, 0.0  ;;  %v4726_v29 = vld [vmem:[%s5027_s17 + $0x280] sm:$0xff]  ;;  %v4757_v56 = vld [vmem:[%s5027_s17 + $0x378] sm:$0xff] }
 0xa2c   : > { %v1973_v45 = vadd.f32 %v1972_v42, %v1528_v27  ;;  %3304 = vmatpush.bf16.msrb.mxu3 %v4724_v31  ;;  %v2108_v62 = vmax.f32 %v1985_v49, 0.0  ;;  %v1533_v31 = vperm.slane %v5485_v0, 3 }
 0xa2d   : > { %v2121_v50 = vmax.f32 %v1945_v41, 0.0  ;;  %3332 = vmatpush.bf16.msrb.mxu2 %v4740_v36  ;;  %v4719_v36 = vld [vmem:[%s5027_s17 + $0x248] sm:$0xff] }
 0xa2e   : > { %v2123_v51 = vmax.f32 %v1973_v45, 0.0  ;;  %3292 = vmatpush.bf16.msra.mxu0 %v4714_v39  ;;  %v4735_v39 = vld [vmem:[%s5027_s17 + $0x2c8] sm:$0xff] }
 0xa2f   : > { %v2137_v57 = vpack.c.bf16 %v2121_v50, %v2105_v48  ;;  %3320 = vmatpush.bf16.msra.mxu1 %v4730_v43  ;;  %v4764_v50 = vld [vmem:[%s5027_s17 + $0x3b0] sm:$0xff] }
 0xa30   : > { %v2139_v59 = vpack.c.bf16 %v2123_v51, %v2107_v46  ;;  %3305 = vmatpush.bf16.msrb.mxu3 %v4723_v47  ;;  %v1958_v55 = vpop.f32.mrf.mxu3 }
 0xa31   : > { %3333 = vmatpush.bf16.msrb.mxu2 %v4739_v33  ;;  %v1959_v61 = vadd.f32 %v1958_v55, %v1527_v40  ;;  %v1986_v53 = vpop.f32.mrf.mxu2  ;;  %3241 = vmatmul.bf16.vlgmr.msrb.gmra.mxu0 %v2137_v57  ;;  %v4718_v33 = vld [vmem:[%s5027_s17 + $0x240] sm:$0xff]  ;;  %v4747_v55 = vld [vmem:[%s5027_s17 + $0x328] sm:$0xff] }
 0xa32   : > { %v1987_v63 = vadd.f32 %v1986_v53, %v1529_v44  ;;  %3269 = vmatmul.bf16.vlgmr.msrb.gmra.mxu1 %v2139_v59  ;;  %3293 = vmatpush.bf16.msra.mxu0 %v4713_v54  ;;  %v1998_v1 = vpop.f32.mrf.mxu0  ;;  %v4748_v44 = vld [vmem:[%s5027_s17 + $0x330] sm:$0xff]  ;;  %v4734_v54 = vld [vmem:[%s5027_s17 + $0x2c0] sm:$0xff]  ;;  %v4763_v53 = vld [vmem:[%s5027_s17 + $0x3a8] sm:$0xff] }
 0xa33   : > { %v2122_v5 = vmax.f32 %v1959_v61, 0.0  ;;  %3321 = vmatpush.bf16.msra.mxu1 %v4729_v58  ;;  %v2026_v6 = vpop.f32.mrf.mxu1  ;;  %v1999_v20 = vadd.f32 %v1998_v1, %v1530_v12  ;;  %v4773_v58 = vld [vmem:[%s5027_s17 + $0x3f8] sm:$0xff] }
 0xa34   : > { %v2124_v7 = vmax.f32 %v1987_v63, 0.0  ;;  %3306 = vmatpush.bf16.msrb.mxu3 %v4722_v21  ;;  %v2027_v25 = vadd.f32 %v2026_v6, %v1532_v15  ;;  %v4756_v63 = vld [vmem:[%s5027_s17 + $0x370] sm:$0xff] }
 0xa35   : > { %v2138_v9 = vpack.c.bf16 %v2122_v5, %v2106_v4  ;;  %3334 = vmatpush.bf16.msrb.mxu2 %v4738_v24  ;;  %v2109_v37 = vmax.f32 %v1999_v20, 0.0  ;;  %v4746_v5 = vld [vmem:[%s5027_s17 + $0x320] sm:$0xff]  ;;  %v1534_v20 = vperm.slane %v5485_v0, 4 }
 0xa36   : > { %v2140_v3 = vpack.c.bf16 %v2124_v7, %v2108_v62  ;;  %3294 = vmatpush.bf16.msra.mxu0 %v4712_v2  ;;  %v2111_v40 = vmax.f32 %v2027_v25, 0.0  ;;  %v4772_v2 = vld [vmem:[%s5027_s17 + $0x3f0] sm:$0xff]  ;;  %v4755_v62 = vld [vmem:[%s5027_s17 + $0x368] sm:$0xff]  ;;  %v1536_v25 = vperm.slane %v5485_v0, 6 }
 0xa37   : > { %3322 = vmatpush.bf16.msra.mxu1 %v4728_v14  ;;  %3255 = vmatmul.bf16.vlgmr.msra.gmra.mxu3 %v2138_v9  ;;  %v4762_v14 = vld [vmem:[%s5027_s17 + $0x3a0] sm:$0xff]  ;;  %v4771_v7 = vld [vmem:[%s5027_s17 + $0x3e8] sm:$0xff]  ;;  %v4761_v9 = vld [vmem:[%s5027_s17 + $0x398] sm:$0xff] }
 0xa38   : > { %3283 = vmatmul.bf16.vlgmr.msra.gmra.mxu2 %v2140_v3  ;;  %3307 = vmatpush.bf16.msrb.mxu3 %v4721_v8  ;;  %v2012_v18 = vpop.f32.mrf.mxu3  ;;  %v4745_v8 = vld [vmem:[%s5027_s17 + $0x318] sm:$0xff] }
 0xa39   : > { %3335 = vmatpush.bf16.msrb.mxu2 %v4737_v13  ;;  %v2040_v22 = vpop.f32.mrf.mxu2  ;;  %v2013_v42 = vadd.f32 %v2012_v18, %v1531_v26  ;;  %v4754_v13 = vld [vmem:[%s5027_s17 + $0x360] sm:$0xff] }
 0xa3a   : > { %3295 = vmatpush.bf16.msra.mxu0 %v4711_v16  ;;  %v2000_v35 = vpop.f32.mrf.mxu0  ;;  %v2041_v45 = vadd.f32 %v2040_v22, %v1533_v31  ;;  %v4744_v16 = vld [vmem:[%s5027_s17 + $0x310] sm:$0xff] }
 0xa3b   : > { %3323 = vmatpush.bf16.msra.mxu1 %v4727_v17  ;;  %v2001_v27 = vadd.f32 %v2000_v35, %v1530_v12  ;;  %v2028_v28 = vpop.f32.mrf.mxu1  ;;  %v2110_v49 = vmax.f32 %v2013_v42, 0.0  ;;  %v4760_v17 = vld [vmem:[%s5027_s17 + $0x390] sm:$0xff]  ;;  %v4743_v35 = vld [vmem:[%s5027_s17 + $0x308] sm:$0xff] }
 0xa3c   : > { %v2029_v32 = vadd.f32 %v2028_v28, %v1532_v15  ;;  %3308 = vmatpush.bf16.msrb.mxu3 %v4720_v19  ;;  %v2112_v21 = vmax.f32 %v2041_v45, 0.0  ;;  %v4770_v15 = vld [vmem:[%s5027_s17 + $0x3e0] sm:$0xff]  ;;  %v4753_v19 = vld [vmem:[%s5027_s17 + $0x358] sm:$0xff]  ;;  %v4752_v28 = vld [vmem:[%s5027_s17 + $0x350] sm:$0xff] }
 0xa3d   : > { %v2125_v38 = vmax.f32 %v2001_v27, 0.0  ;;  %3336 = vmatpush.bf16.msrb.mxu2 %v4736_v23  ;;  %v4769_v23 = vld [vmem:[%s5027_s17 + $0x3d8] sm:$0xff]  ;;  %v4751_v42 = vld [vmem:[%s5027_s17 + $0x348] sm:$0xff] }
 0xa3e   : > { %v2127_v41 = vmax.f32 %v2029_v32, 0.0  ;;  %3296 = vmatpush.bf16.msra.mxu0 %v4710_v52  ;;  %v4767_v45 = vld [vmem:[%s5027_s17 + $0x3c8] sm:$0xff] }
 0xa3f   : > { %v2141_v43 = vpack.c.bf16 %v2125_v38, %v2109_v37  ;;  %3324 = vmatpush.bf16.msra.mxu1 %v4726_v29 }
 0xa40   : > { %v2143_v47 = vpack.c.bf16 %v2127_v41, %v2111_v40  ;;  %3309 = vmatpush.bf16.msrb.mxu3 %v4719_v36  ;;  %v2014_v48 = vpop.f32.mrf.mxu3  ;;  %v1535_v36 = vperm.slane %v5485_v0, 5  ;;  %v1537_v40 = vperm.slane %v5485_v0, 7 }
 0xa41   : > { %3337 = vmatpush.bf16.msrb.mxu2 %v4735_v39  ;;  %v2015_v46 = vadd.f32 %v2014_v48, %v1531_v26  ;;  %v2042_v51 = vpop.f32.mrf.mxu2  ;;  %3297 = vmatmul.bf16.vlgmr.msra.gmra.mxu0 %v2141_v43  ;;  %v4759_v26 = vld [vmem:[%s5027_s17 + $0x388] sm:$0xff]  ;;  %v4758_v39 = vld [vmem:[%s5027_s17 + $0x380] sm:$0xff] }
 0xa42   : > { %3345 = vmatpush.bf16.msrb.mxu0 %v4749_v30  ;;  %v2043_v57 = vadd.f32 %v2042_v51, %v1533_v31  ;;  %3325 = vmatmul.bf16.vlgmr.msra.gmra.mxu1 %v2143_v47  ;;  %v2054_v4 = vpop.f32.mrf.mxu0  ;;  %v4768_v30 = vld [vmem:[%s5027_s17 + $0x3d0] sm:$0xff] }
 0xa43   : > { %3373 = vmatpush.bf16.msrb.mxu1 %v4765_v34  ;;  %v2126_v59 = vmax.f32 %v2015_v46, 0.0  ;;  %v2082_v6 = vpop.f32.mrf.mxu1  ;;  %v2055_v29 = vadd.f32 %v2054_v4, %v1534_v20  ;;  %v4742_v34 = vld [vmem:[%s5027_s17 + $0x300] sm:$0xff] }
 0xa44   : > { %v2128_v61 = vmax.f32 %v2043_v57, 0.0  ;;  %3310 = vmatpush.bf16.msrb.mxu3 %v4718_v33  ;;  %v2083_v31 = vadd.f32 %v2082_v6, %v1536_v25 }
 0xa45   : > { %v2142_v24 = vpack.c.bf16 %v2126_v59, %v2110_v49  ;;  %3338 = vmatpush.bf16.msrb.mxu2 %v4734_v54  ;;  %v2113_v43 = vmax.f32 %v2055_v29, 0.0  ;;  %v4750_v54 = vld [vmem:[%s5027_s17 + $0x340] sm:$0xff] }
 0xa46   : > { %3346 = vmatpush.bf16.msrb.mxu0 %v4748_v44  ;;  %v2144_v1 = vpack.c.bf16 %v2128_v61, %v2112_v21  ;;  %v2115_v47 = vmax.f32 %v2083_v31, 0.0 }
 0xa47   : > { %3374 = vmatpush.bf16.msrb.mxu1 %v4764_v50  ;;  %3311 = vmatmul.bf16.vlgmr.msrb.gmra.mxu3 %v2142_v24 }
 0xa48   : > { %3359 = vmatpush.bf16.msra.mxu3 %v4757_v56  ;;  %3339 = vmatmul.bf16.vlgmr.msrb.gmra.mxu2 %v2144_v1  ;;  %v2068_v12 = vpop.f32.mrf.mxu3  ;;  %v4766_v56 = vld [vmem:[%s5027_s17 + $0x3c0] sm:$0xff] }
 0xa49   : > { %3387 = vmatpush.bf16.msra.mxu2 %v4773_v58  ;;  %v2096_v3 = vpop.f32.mrf.mxu2  ;;  %v2069_v50 = vadd.f32 %v2068_v12, %v1535_v36 }
 0xa4a   : > { %3347 = vmatpush.bf16.msrb.mxu0 %v4747_v55  ;;  %v2056_v18 = vpop.f32.mrf.mxu0  ;;  %v2097_v46 = vadd.f32 %v2096_v3, %v1537_v40 }
 0xa4b   : > { %3375 = vmatpush.bf16.msrb.mxu1 %v4763_v53  ;;  %v2084_v22 = vpop.f32.mrf.mxu1  ;;  %v2057_v52 = vadd.f32 %v2056_v18, %v1534_v20  ;;  %v2114_v58 = vmax.f32 %v2069_v50, 0.0 }
 0xa4c   : > { %3360 = vmatpush.bf16.msra.mxu3 %v4756_v63  ;;  %v2085_v27 = vadd.f32 %v2084_v22, %v1536_v25  ;;  %v2116_v49 = vmax.f32 %v2097_v46, 0.0 }
 0xa4d   : > { %3388 = vmatpush.bf16.msra.mxu2 %v4772_v2  ;;  %v2129_v37 = vmax.f32 %v2057_v52, 0.0 }
 0xa4e   : > { %3348 = vmatpush.bf16.msrb.mxu0 %v4746_v5  ;;  %v2131_v41 = vmax.f32 %v2085_v27, 0.0  ;;  %v4800_v5 = vld [vmem:[%s646_s29] ss:$0 sm:$0xff] }
 0xa4f   : > { %3376 = vmatpush.bf16.msrb.mxu1 %v4762_v14  ;;  %v2145_v33 = vpack.c.bf16 %v2129_v37, %v2113_v43 }
 0xa50   : > { %3361 = vmatpush.bf16.msra.mxu3 %v4755_v62  ;;  %v2070_v32 = vpop.f32.mrf.mxu3  ;;  %v2147_v51 = vpack.c.bf16 %v2131_v41, %v2115_v47 }
 0xa51   : > { %3389 = vmatpush.bf16.msra.mxu2 %v4771_v7  ;;  %v2098_v38 = vpop.f32.mrf.mxu2  ;;  %v2071_v44 = vadd.f32 %v2070_v32, %v1535_v36 }
 0xa52   : > { %3349 = vmatpush.bf16.msrb.mxu0 %v4745_v8  ;;  %v2099_v48 = vadd.f32 %v2098_v38, %v1537_v40 }
 0xa53   : > { %3377 = vmatpush.bf16.msrb.mxu1 %v4761_v9  ;;  %v2130_v0 = vmax.f32 %v2071_v44, 0.0 }
 0xa54   : > { %3362 = vmatpush.bf16.msra.mxu3 %v4754_v13  ;;  %v2132_v57 = vmax.f32 %v2099_v48, 0.0 }
 0xa55   : > { %3390 = vmatpush.bf16.msra.mxu2 %v4770_v15  ;;  %v2146_v59 = vpack.c.bf16 %v2130_v0, %v2114_v58 }
 0xa56   : > { %3350 = vmatpush.bf16.msrb.mxu0 %v4744_v16  ;;  %v2148_v55 = vpack.c.bf16 %v2132_v57, %v2116_v49 }
 0xa57   : > { %3378 = vmatpush.bf16.msrb.mxu1 %v4760_v17 }
 0xa58   : > { %3363 = vmatpush.bf16.msra.mxu3 %v4753_v19 }
 0xa59   : > { %3391 = vmatpush.bf16.msra.mxu2 %v4769_v23 }
 0xa5a   : > { %3351 = vmatpush.bf16.msrb.mxu0 %v4743_v35 }
 0xa5b   : > { %3379 = vmatpush.bf16.msrb.mxu1 %v4759_v26 }
 0xa5c   : > { %3364 = vmatpush.bf16.msra.mxu3 %v4752_v28 }
 0xa5d   : > { %3392 = vmatpush.bf16.msra.mxu2 %v4768_v30 }
 0xa5e   : > { %3352 = vmatpush.bf16.msrb.mxu0 %v4742_v34 }
 0xa5f   : > { %3380 = vmatpush.bf16.msrb.mxu1 %v4758_v39 }
 0xa60   : > { %3365 = vmatpush.bf16.msra.mxu3 %v4751_v42 }
 0xa61   : > { %3393 = vmatpush.bf16.msra.mxu2 %v4767_v45  ;;  %3353 = vmatmul.bf16.vlgmr.msrb.gmra.mxu0 %v2145_v33 }
 0xa62   : > { %3381 = vmatmul.bf16.vlgmr.msrb.gmra.mxu1 %v2147_v51 }
 0xa64   : > { %3366 = vmatpush.bf16.msra.mxu3 %v4750_v54 }
 0xa65   : > { %3394 = vmatpush.bf16.msra.mxu2 %v4766_v56 }
 0xa67   : > { %3367 = vmatmul.bf16.vlgmr.msra.gmra.mxu3 %v2146_v59 }
 0xa68   : > { %3395 = vmatmul.bf16.vlgmr.msra.gmra.mxu2 %v2148_v55 }
 0xa9e   : > { %v3186_v21 = vpop.f32.mrf.mxu0 }
 0xa9f   : > { %v3214_v61 = vpop.f32.mrf.mxu1  ;;  %v3187_v14 = vadd.f32 %v4800_v5, %v3186_v21 }
 0xaa6   : > { %v3188_v63 = vpop.f32.mrf.mxu0 }
 0xaa7   : > { %v3216_v1 = vpop.f32.mrf.mxu1  ;;  %v3189_v3 = vadd.f32 %v4800_v5, %v3188_v63 }
 0xaaa   : > { %v3200_v53 = vpop.f32.mrf.mxu3 }
 0xaab   : > { %v3228_v24 = vpop.f32.mrf.mxu2  ;;  %v3201_v62 = vadd.f32 %v3200_v53, %v3187_v14 }
 0xaad   : > { %v3215_v12 = vadd.f32 %v3214_v61, %v3201_v62 }
 0xaae   : > { %v3242_v6 = vpop.f32.mrf.mxu0 }
 0xaaf   : > { %v3270_v7 = vpop.f32.mrf.mxu1  ;;  %v3229_v15 = vadd.f32 %v3228_v24, %v3215_v12 }
 0xab1   : > { %v3243_v19 = vadd.f32 %v3242_v6, %v3229_v15 }
 0xab2   : > { %v3202_v2 = vpop.f32.mrf.mxu3 }
 0xab3   : > { %v3230_v4 = vpop.f32.mrf.mxu2  ;;  %v3203_v16 = vadd.f32 %v3202_v2, %v3189_v3 }
 0xab5   : > { %v3217_v20 = vadd.f32 %v3216_v1, %v3203_v16 }
 0xab6   : > { %v3244_v13 = vpop.f32.mrf.mxu0 }
 0xab7   : > { %v3272_v17 = vpop.f32.mrf.mxu1  ;;  %v3231_v35 = vadd.f32 %v3230_v4, %v3217_v20 }
 0xab9   : > { %v3245_v26 = vadd.f32 %v3244_v13, %v3231_v35 }
 0xaba   : > { %v3256_v8 = vpop.f32.mrf.mxu3 }
 0xabb   : > { %v3284_v9 = vpop.f32.mrf.mxu2  ;;  %v3257_v23 = vadd.f32 %v3256_v8, %v3243_v19 }
 0xabd   : > { %v3271_v52 = vadd.f32 %v3270_v7, %v3257_v23 }
 0xabe   : > { %v3298_v25 = vpop.f32.mrf.mxu0 }
 0xabf   : > { %v3326_v27 = vpop.f32.mrf.mxu1  ;;  %v3285_v29 = vadd.f32 %v3284_v9, %v3271_v52 }
 0xac1   : > { %v3299_v34 = vadd.f32 %v3298_v25, %v3285_v29  ;;  %v4802_v29 = vld [vmem:[%s658_s2] ss:$0 sm:$0xff]  ;;  %s5642_s2 = sld [smem:[#allocation13_spill]] (!%p4560_p5) }
 0xac2   : > { %v3258_v18 = vpop.f32.mrf.mxu3 }
 0xac3   : > { %v3286_v22 = vpop.f32.mrf.mxu2  ;;  %v3259_v30 = vadd.f32 %v3258_v18, %v3245_v26 }
 0xac5   : > { %v3273_v36 = vadd.f32 %v3272_v17, %v3259_v30 }
 0xac6   : > { %v3300_v32 = vpop.f32.mrf.mxu0 }
 0xac7   : > { %v3287_v38 = vadd.f32 %v3286_v22, %v3273_v36  ;;  %v3328_v39 = vpop.f32.mrf.mxu1 }
 0xac9   : > { %v3301_v44 = vadd.f32 %v3300_v32, %v3287_v38 }
 0xaca   : > { %v3312_v28 = vpop.f32.mrf.mxu3 }
 0xacb   : > { %v3340_v31 = vpop.f32.mrf.mxu2  ;;  %v3313_v37 = vadd.f32 %v3312_v28, %v3299_v34 }
 0xacd   : > { %v3327_v41 = vadd.f32 %v3326_v27, %v3313_v37  ;;  %v4801_v27 = vld [vmem:[%s655_s6] ss:$0 sm:$0xff] }
 0xacf   : > { %v3341_v45 = vadd.f32 %v3340_v31, %v3327_v41 }
 0xad2   : > { %v3314_v40 = vpop.f32.mrf.mxu3 }
 0xad3   : > { %v3342_v42 = vpop.f32.mrf.mxu2  ;;  %v3315_v47 = vadd.f32 %v3314_v40, %v3301_v44 }
 0xad5   : > { %v3329_v46 = vadd.f32 %v3328_v39, %v3315_v47 }
 0xad7   : > { %v3343_v57 = vadd.f32 %v3342_v42, %v3329_v46 }
 0xade   : > { %v3354_v43 = vpop.f32.mrf.mxu0 }
 0xadf   : > { %v3355_v48 = vadd.f32 %v3354_v43, %v3341_v45  ;;  %v3382_v50 = vpop.f32.mrf.mxu1 }
 0xae6   : > { %v3356_v56 = vpop.f32.mrf.mxu0 }
 0xae7   : > { %v3357_v49 = vadd.f32 %v3356_v56, %v3343_v57  ;;  %v3384_v53 = vpop.f32.mrf.mxu1 }
 0xaea   : > { %v3368_v33 = vpop.f32.mrf.mxu3 }
 0xaeb   : > { %v3369_v51 = vadd.f32 %v3368_v33, %v3355_v48  ;;  %v3396_v54 = vpop.f32.mrf.mxu2 }
 0xaed   : > { %v3383_v0 = vadd.f32 %v3382_v50, %v3369_v51 }
 0xaef   : > { %v3397_v58 = vadd.f32 %v3396_v54, %v3383_v0 }
 0xaf1   : > { %v3401_v59 = vadd.f32 %v3397_v58, %v5292_v10 }
 0xaf2   : > { %v3370_v55 = vpop.f32.mrf.mxu3 }
 0xaf3   : > { %v3371_v21 = vadd.f32 %v3370_v55, %v3357_v49  ;;  %v3405_v61 = vsel %vm726_vm1, %v3401_v59, 0.0  ;;  %v3398_v63 = vpop.f32.mrf.mxu2 }
 0xaf4   : > { %3406 = vadd.xlane.f32.xlu0 %v3405_v61 }
 0xaf5   : > { %v3385_v24 = vadd.f32 %v3384_v53, %v3371_v21 }
 0xaf7   : > { %v3399_v1 = vadd.f32 %v3398_v63, %v3385_v24 }
 0xaf9   : > { %v3402_v2 = vadd.f32 %v3399_v1, %v5294_v11 }
 0xafb   : > { %v3408_v4 = vsel %vm726_vm1, %v3402_v2, 0.0 }
 0xafc   : > { %3409 = vadd.xlane.f32.xlu1 %v3408_v4 }
 0xb67   : > { %v3407_v5 = vpop.xlane.xlu0 %3406 }
 0xb68   : > { %v3411_v6 = vmul.f32 %v3407_v5, %v5190_v60 }
 0xb6a   : > { %v3413_v14 = vsub.f32 %v3401_v59, %v3411_v6 }
 0xb6c   : > { %v3415_v62 = vmul.f32 %v3413_v14, %v3413_v14 }
 0xb6e   : > { %v3417_v10 = vsel %vm726_vm1, %v3415_v62, 0.0 }
 0xb6f   : > { %v3410_v7 = vpop.xlane.xlu1 %3409  ;;  %3418 = vadd.xlane.f32.xlu2 %v3417_v10 }
 0xb70   : > { %v3412_v8 = vmul.f32 %v3410_v7, %v5190_v60 }
 0xb72   : > { %v3414_v9 = vsub.f32 %v3402_v2, %v3412_v8 }
 0xb74   : > { %v3416_v12 = vmul.f32 %v3414_v9, %v3414_v9 }
 0xb76   : > { %v3420_v13 = vsel %vm726_vm1, %v3416_v12, 0.0 }
 0xb77   : > { %3421 = vadd.xlane.f32.xlu0 %v3420_v13 }
 0xbe2   : > { %v3419_v11 = vpop.xlane.xlu2 %3418 }
 0xbe3   : > { %v3423_v3 = vmul.f32 %v3419_v11, %v5190_v60 }
 0xbe5   : > { %v3425_v15 = vadd.f32 1e-05, %v3423_v3 }
 0xbe7   : > { %4841 = vrsqrt.f32 %v3425_v15  ;;  %vm3433_vm12 = vweird.f32 %v3425_v15 }
 0xbea   : > { %v3422_v16 = vpop.xlane.xlu0 %3421 }
 0xbeb   : > { %v3424_v17 = vmul.f32 %v3422_v16, %v5190_v60 }
 0xbed   : > { %v4842_v18 = vpop.eup %4841  ;;  %v3426_v19 = vadd.f32 1e-05, %v3424_v17 }
 0xbee   : > { %v3428_v20 = vmul.f32 %v4842_v18, %v3425_v15  ;;  %vm3434_vm11 = vweird.f32 %v4842_v18 }
 0xbef   : > { %4843 = vrsqrt.f32 %v3426_v19  ;;  %vm3435_vm13 = vmor %vm3433_vm12, %vm3434_vm11  ;;  %vm3443_vm15 = vweird.f32 %v3426_v19 }
 0xbf0   : > { %v3429_v22 = vmul.f32 %v4842_v18, %v3428_v20 }
 0xbf2   : > { %v3430_v23 = vmul.f32 0.5, %v3429_v22 }
 0xbf4   : > { %v3431_v25 = vsub.f32 1.5, %v3430_v23 }
 0xbf5   : > { %v4844_v35 = vpop.eup %4843 }
 0xbf6   : > { %v3432_v52 = vmul.f32 %v4842_v18, %v3431_v25  ;;  %v3438_v26 = vmul.f32 %v4844_v35, %v3426_v19  ;;  %vm3444_vm14 = vweird.f32 %v4844_v35 }
 0xbf7   : > { %vm3445_vm0 = vmor %vm3443_vm15, %vm3444_vm14 }
 0xbf8   : > { %v3436_v60 = vsel %vm3435_vm13, %v4842_v18, %v3432_v52  ;;  %v3439_v28 = vmul.f32 %v4844_v35, %v3438_v26 }
 0xbf9   : > { %v3447_v30 = vmul.f32 %v3436_v60, %v3413_v14 }
 0xbfa   : > { %v3440_v31 = vmul.f32 0.5, %v3439_v28 }
 0xbfb   : > { %v3452_v32 = vmul.f32 %v4801_v27, %v3447_v30 }
 0xbfc   : > { %v3441_v34 = vsub.f32 1.5, %v3440_v31 }
 0xbfd   : > { %v3457_v36 = vadd.f32 %v4802_v29, %v3452_v32 }
 0xbfe   : > { %v3442_v37 = vmul.f32 %v4844_v35, %v3441_v34 }
 0xbff   : > { %3459 = vst.msk [vmem:[#allocation2] sm:$0xff] %vm726_vm1, %v3457_v36 }
 0xc00   : > { %v3446_v38 = vsel %vm3445_vm0, %v4844_v35, %v3442_v37 }
 0xc01   : > { %v3448_v39 = vmul.f32 %v3446_v38, %v3414_v9 }
 0xc03   : > { %v3453_v40 = vmul.f32 %v4801_v27, %v3448_v39  ;;  %3464 = sbr.rel (%p4560_p5) target bundleno = 3225 (0xc99), region = 88 }
 0xc05   : > { %v3458_v41 = vadd.f32 %v4802_v29, %v3453_v40 }
 0xc07   : > { %3460 = vst.msk [vmem:[#allocation2 + $0x8] sm:$0xff] %vm726_vm1, %v3458_v41 }
 0xc08   : > { %v3488_v42 = vld [vmem:[%s5642_s2 + $0x38] sm:$0xff]  ;;  %v3487_v43 = vld [vmem:[%s5642_s2 + $0x30] sm:$0xff]  ;;  %v3465_v44 = vsel %vm726_vm1, %v3457_v36, 0.0  ;;  %v3472_v45 = vsel %vm726_vm1, %v3458_v41, 0.0  ;;  %v3486_v50 = vld [vmem:[%s5642_s2 + $0x28] sm:$0xff]  ;;  %vm3495_vm2 = vcmask 1041409  }
 0xc09   : > { %3507 = vmatpush.msra.mxu0 %v3488_v42  ;;  %v3466_v47 = vrot.slane %v3465_v44, 4  ;;  %v3473_v48 = vrot.slane %v3472_v45, 4  ;;  %v3485_v51 = vld [vmem:[%s5642_s2 + $0x20] sm:$0xff]  ;;  %v3484_v56 = vld [vmem:[%s5642_s2 + $0x18] sm:$0xff]  ;;  %v3483_v49 = vld [vmem:[%s5642_s2 + $0x10] sm:$0xff]  ;;  %vm3519_vm3 = vcmask 17408  }
 0xc0a   : > { %v3482_v21 = vld [vmem:[%s5642_s2 + $0x8] sm:$0xff]  ;;  %v3481_v24 = vld [vmem:[%s5642_s2] sm:$0xff] }
 0xc0b   : > { %3508 = vmatpush.msra.mxu0 %v3487_v43  ;;  %v3467_v33 = vadd.f32 %v3466_v47, %v3465_v44  ;;  %v3474_v46 = vadd.f32 %v3473_v48, %v3472_v45  ;;  %v4845_v4 = vld [vmem:[%s5643_s26] ss:$0 sm:$0xff] }
 0xc0d   : > { %3509 = vmatpush.msra.mxu0 %v3486_v50  ;;  %v3468_v54 = vrot.slane %v3467_v33, 2  ;;  %v3475_v0 = vrot.slane %v3474_v46, 2 }
 0xc0f   : > { %3510 = vmatpush.msra.mxu0 %v3485_v51  ;;  %v3469_v57 = vadd.f32 %v3468_v54, %v3467_v33  ;;  %v3476_v58 = vadd.f32 %v3475_v0, %v3474_v46 }
 0xc11   : > { %3511 = vmatpush.msra.mxu0 %v3484_v56  ;;  %v3470_v59 = vrot.slane %v3469_v57, 1  ;;  %v3477_v55 = vrot.slane %v3476_v58, 1 }
 0xc13   : > { %3512 = vmatpush.msra.mxu0 %v3483_v49  ;;  %v3471_v61 = vadd.f32 %v3470_v59, %v3469_v57  ;;  %v3478_v53 = vadd.f32 %v3477_v55, %v3476_v58 }
 0xc15   : > { %3513 = vmatpush.msra.mxu0 %v3482_v21  ;;  %v3479_v63 = vmul.f32 0.125, %v3471_v61  ;;  %v3480_v1 = vmul.f32 0.125, %v3478_v53 }
 0xc17   : > { %3514 = vmatpush.msra.mxu0 %v3481_v24  ;;  %v3496_v2 = vsel %vm3495_vm2, %v3480_v1, %v3479_v63 }
 0xc18   : > { %4561 = vmatmul.msk.f32.vlgmr.msra.gmra.mxu0 %vm726_vm1, %v3496_v2 }
 0xc95   : > { %v3516_v5 = vpop.f32.mrf.mxu0 }
 0xc96   : > { %v3517_v6 = vadd.f32 %v4845_v4, %v3516_v5 }
 0xc98   : > { %3520 = vst.msk [vmem:[#allocation3] sm:$0x3] %vm3519_vm3, %v3517_v6 }
 0xc99 PF: > { %p4778_p6 = scmp.eq.s32.totalorder %s4981_s19, 1  ;;  %s4894_s5 = smov [#allocation3]  }
 0xc9a   : > { %s3527_s25 = sshll.u32 %s4894_s5, 4  ;;  %s5644_s27 = sld [smem:[#allocation15_spill]]  ;;  %s3528_s25 = int_to_ptr.vmem [resolvable:$true] %s3527_s25 }
 0xca0   : > { %s3529_s28 = sshll.u32 %s5644_s27, 4  ;;  %s3530_s28 = int_to_ptr.hbm [resolvable:$true] %s3529_s28 }
 0xca1   : > { %4775 = dma.vmem_to_hbm [thread:$0]  (%p4778_p6), %s3528_s25, 32, %s3530_s28, [#allocation4]  }
 0xca2   : > { %4879 = dma.done.wait (%p4778_p6), [#allocation4], 32  }
 0xca3   : > { %4881 = vsyncadd (%p4778_p6), [#allocation4], 4294967264 }
 0xca4 PF: > { %s5645_s23 = sld [smem:[#allocation6_spill]] }
 0xcaa   : > { %s26_s18 = sadd.s32 1, %s5645_s23  }
 0xcab   : > { %p23_p7 = scmp.ge.s32.totalorder %s26_s18, 4  }
 0xcad   :  { %25 = sbr.rel (!%p23_p7) target bundleno = 10 (0xa), region = 148 }
 0xcb2   :  { %3543 = vsyncpa [#allocation4], 1 }
 0xcb3   :  { %3545 = vsyncpa [#allocation4 + $0x1], 1 }

</bundles_post_ra>
